<compile_context>
chip_gen: v7x
topology: tpu7x:2x2x1
jax: 0.10.0
libtpu: 0.0.40
codegen_flags: <defaults>
</compile_context>

<pallas_src>
import functools

import numpy as np
import jax
import jax.numpy as jnp
from jax.experimental import pallas as pl
from jax.experimental.pallas import tpu as pltpu

_EPS = 1e-6
_BLK = 128          # lane width of every block (padded K dim and each result block)
_PACK_ROWS = 32     # 4 sublane-aligned groups of 8 rows: base / sign / displace / center


# ----------------------------------------------------------------------------
# Pallas kernel
# ----------------------------------------------------------------------------
def _deform_losses_kernel(packed_ref, mstk_ref, xt_ref, loss_ref, *, ne):
    p = packed_ref[...]              # (32, 128) f32
    base = p[0:8, :]                 # log(|v|/(1-|v|)) of template*0.5 (precomputed, rows 3:8 = 0)
    sgn = p[8:16, :]                 # sign(template*0.5)               (precomputed, rows 3:8 = 0)
    disp = p[16:24, :]               # displace parameter               (rows 3:8 = 0)
    ctr = p[24:32, :]                # center parameter broadcast along lanes (rows 3:8 = 0)

    # --- vertex deformation: short EUP chain (tanh, sigmoid) + VPU ----------
    # Padded rows/cols stay finite (0 or 2*tanh(center)) and hit zero rows of
    # the stacked RHS, so they never reach the losses.
    centroid = jnp.tanh(ctr)
    x = jax.nn.sigmoid(base + disp) * sgn
    x = jnp.maximum(x, 0.0) * (1.0 - centroid) - jnp.maximum(-x, 0.0) * (centroid + 1.0)
    x = (x + centroid) * 2.0         # (8, 128); rows 3:8 are exact 0
    xt_ref[...] = x                  # full-tile unmasked store

    # --- one fused MXU matmul: Laplacian rows + edge-difference vectors ------
    r = jnp.dot(x, mstk_ref[...],
                precision=jax.lax.Precision.HIGHEST,
                preferred_element_type=jnp.float32)   # (8, 512)

    lap = r[:, 0 * _BLK:1 * _BLK]    # L @ x   (rows 3:8 and cols nv:128 exact 0)
    a1 = r[:, 1 * _BLK:2 * _BLK]     # v1 - v0 (cols ne:128 exact 0)
    b1 = r[:, 2 * _BLK:3 * _BLK]     # v2 - v0
    b2 = r[:, 3 * _BLK:4 * _BLK]     # v3 - v0

    # component-major "dot over xyz": 3 VPU FMAs over lane-dense rows
    def dot3(u, w):
        return (u[0:1, :] * w[0:1, :]
                + u[1:2, :] * w[1:2, :]
                + u[2:3, :] * w[2:3, :])             # (1, 128)

    lap2 = dot3(lap, lap)            # per-vertex |L@x|^2
    a1l2 = dot3(a1, a1)
    b1l2 = dot3(b1, b1)
    b2l2 = dot3(b2, b2)
    ab1 = dot3(a1, b1)
    ab2 = dot3(a1, b2)               # a2 == a1 in the reference, so reuse

    cos1 = ab1 * jax.lax.rsqrt((a1l2 + _EPS) * (b1l2 + _EPS))
    cos2 = ab2 * jax.lax.rsqrt((a1l2 + _EPS) * (b2l2 + _EPS))

    inv_a1l2 = 1.0 / (a1l2 + _EPS)   # exact (matches reference projection)
    cb1 = b1 - a1 * (ab1 * inv_a1l2)
    cb2 = b2 - a1 * (ab2 * inv_a1l2)

    # cb1l1*cb2l1 = sqrt((b1l2+eps)(1-cos1^2+eps)(b2l2+eps)(1-cos2^2+eps)):
    # collapse the reference's 4 sqrts + reciprocal into a single rsqrt.
    denom_sq = ((b1l2 + _EPS) * (b2l2 + _EPS)
                * (1.0 - cos1 * cos1 + _EPS) * (1.0 - cos2 * cos2 + _EPS))
    cosv = dot3(cb1, cb2) * jax.lax.rsqrt(denom_sq)

    # zero-padded edge columns would each contribute (0+1)^2 = 1 -> mask them
    col = jax.lax.broadcasted_iota(jnp.int32, cosv.shape, 1)
    flat_terms = jnp.where(col < ne, (cosv + 1.0) * (cosv + 1.0), 0.0)

    # merged epilogue: one shared cross-lane reduce for both losses -> SMEM
    combined = jnp.concatenate([lap2, flat_terms], axis=0)   # (2, 128)
    sums = jnp.sum(combined, axis=1, keepdims=True)          # (2, 1)
    loss_ref[0] = jnp.sum(sums[0:1, :])                      # trivial extract
    loss_ref[1] = jnp.sum(sums[1:2, :])


# ----------------------------------------------------------------------------
# Wrapper (single jitted dispatch: packing + kernel + slicing + broadcast)
# ----------------------------------------------------------------------------
@functools.partial(jax.jit, static_argnames=("nv", "ne", "batch_size"))
def model_forward(packed_const, displace, center, m_stacked, faces, *, nv, ne, batch_size):
    # Insert the learnable parameters into the precomputed constant tile.
    packed = packed_const.at[16:19, :nv].set(displace.T)
    packed = packed.at[24:27, :].set(jnp.broadcast_to(center.reshape(3, 1), (3, _BLK)))

    kernel = functools.partial(_deform_losses_kernel, ne=ne)
    vmem = pltpu.MemorySpace.VMEM
    xt, losses = pl.pallas_call(
        kernel,
        out_shape=(
            jax.ShapeDtypeStruct((8, _BLK), jnp.float32),   # deformed verts, full-vreg tile
            jax.ShapeDtypeStruct((2,), jnp.float32),        # [laplacian_loss, flatten_loss]
        ),
        in_specs=[pl.BlockSpec(memory_space=vmem),
                  pl.BlockSpec(memory_space=vmem)],
        out_specs=(
            pl.BlockSpec(memory_space=vmem),
            pl.BlockSpec(memory_space=pltpu.MemorySpace.SMEM),
        ),
    )(packed, m_stacked)

    verts = xt[:3, :nv].T                                               # (NV, 3)
    verts_b = jnp.broadcast_to(verts[None], (batch_size, nv, 3))        # no HBM copies
    faces_b = jnp.broadcast_to(faces[None], (batch_size,) + faces.shape)
    return verts_b, faces_b, losses[0], losses[1]


# ----------------------------------------------------------------------------
# Host-side setup (mirrors Model.__init__ / LaplacianLoss / FlattenLoss __init__)
# ----------------------------------------------------------------------------
def build_icosahedron(key):
    phi = (1.0 + np.sqrt(5.0)) / 2.0
    verts = np.array([
        [-1,  phi, 0], [1,  phi, 0], [-1, -phi, 0], [1, -phi, 0],
        [0, -1,  phi], [0, 1,  phi], [0, -1, -phi], [0, 1, -phi],
        [phi, 0, -1], [phi, 0, 1], [-phi, 0, -1], [-phi, 0, 1],
    ], dtype=np.float32)
    verts /= np.linalg.norm(verts, axis=1, keepdims=True)
    faces = np.array([
        [0, 11, 5], [0, 5, 1], [0, 1, 7], [0, 7, 10], [0, 10, 11],
        [1, 5, 9], [5, 11, 4], [11, 10, 2], [10, 7, 6], [7, 1, 8],
        [3, 9, 4], [3, 4, 2], [3, 2, 6], [3, 6, 8], [3, 8, 9],
        [4, 9, 5], [2, 4, 11], [6, 2, 10], [8, 6, 7], [9, 8, 1],
    ], dtype=np.int32)
    # deterministic jitter so no coordinate is exactly 0 and |v| < 1
    jitter = np.asarray(jax.random.uniform(key, verts.shape, jnp.float32, 0.01, 0.05))
    verts = verts * 0.85 + jitter
    return verts.astype(np.float32), faces


def build_laplacian(nv, faces):
    lap = np.zeros((nv, nv), dtype=np.float32)
    lap[faces[:, 0], faces[:, 1]] = -1
    lap[faces[:, 1], faces[:, 0]] = -1
    lap[faces[:, 1], faces[:, 2]] = -1
    lap[faces[:, 2], faces[:, 1]] = -1
    lap[faces[:, 2], faces[:, 0]] = -1
    lap[faces[:, 0], faces[:, 2]] = -1
    r, c = np.diag_indices(nv)
    lap[r, c] = -lap.sum(1)
    for i in range(nv):
        lap[i, :] /= lap[i, i]
    return lap


def build_flatten_indices(faces):
    pairs = np.sort(np.concatenate((faces[:, 0:2], faces[:, 1:3]), axis=0), axis=1)
    edges = sorted(set(map(tuple, pairs.tolist())))
    v0s = np.array([e[0] for e in edges], np.int32)
    v1s = np.array([e[1] for e in edges], np.int32)
    v2s, v3s = [], []
    for v0, v1 in zip(v0s, v1s):
        count = 0
        for face in faces:
            if v0 in face and v1 in face:
                rest = face[(face != v0) & (face != v1)]
                if count == 0:
                    v2s.append(int(rest[0]))
                    count += 1
                else:
                    v3s.append(int(rest[0]))
    return v0s, v1s, np.array(v2s, np.int32), np.array(v3s, np.int32)


def build_stacked_matrix(laplacian, faces):
    """[laplacian | G1-G0 | G2-G0 | G3-G0] as one zero-padded (128, 512) operand."""
    nv = laplacian.shape[0]
    v0i, v1i, v2i, v3i = build_flatten_indices(faces)
    ne = len(v0i)
    assert nv <= _BLK and ne <= _BLK, "single-block layout assumes small template mesh"

    def onehot(idx):
        m = np.zeros((ne, nv), dtype=np.float32)
        m[np.arange(ne), idx] = 1.0
        return m

    g0 = onehot(v0i)
    d1 = onehot(v1i) - g0
    d2 = onehot(v2i) - g0
    d3 = onehot(v3i) - g0

    stk = np.zeros((4 * _BLK, _BLK), dtype=np.float32)   # columns = K dim padded to 128
    stk[0:nv, :nv] = laplacian
    stk[1 * _BLK:1 * _BLK + ne, :nv] = d1
    stk[2 * _BLK:2 * _BLK + ne, :nv] = d2
    stk[3 * _BLK:3 * _BLK + ne, :nv] = d3
    return np.ascontiguousarray(stk.T), (v0i, v1i, v2i, v3i), ne   # (128, 512)


def build_packed_const(verts_half_np, nv):
    """Constant part of the packed tile: precomputed logit(|v|) and sign(v)."""
    pc = np.zeros((_PACK_ROWS, _BLK), dtype=np.float32)
    absv = np.abs(verts_half_np)
    pc[0:3, :nv] = np.log(absv / (1.0 - absv)).T
    pc[8:11, :nv] = np.sign(verts_half_np).T
    return jnp.asarray(pc)


# ----------------------------------------------------------------------------
# Pure-JAX reference (torch-exact formulas, for correctness check)
# ----------------------------------------------------------------------------
def reference_forward(vertices, displace, center, laplacian, v0i, v1i, v2i, v3i):
    base = jnp.log(jnp.abs(vertices) / (1.0 - jnp.abs(vertices)))
    centroid = jnp.tanh(center)
    x = jax.nn.sigmoid(base + displace) * jnp.sign(vertices)
    x = jax.nn.relu(x) * (1.0 - centroid) - jax.nn.relu(-x) * (centroid + 1.0)
    x = (x + centroid) * 2.0
    lx = jnp.dot(laplacian, x, precision=jax.lax.Precision.HIGHEST)
    lap_loss = jnp.sum(lx ** 2)

    v0, v1, v2, v3 = x[v0i], x[v1i], x[v2i], x[v3i]
    a1, b1 = v1 - v0, v2 - v0
    a1l2, b1l2 = jnp.sum(a1 * a1, -1), jnp.sum(b1 * b1, -1)
    a1l1, b1l1 = jnp.sqrt(a1l2 + _EPS), jnp.sqrt(b1l2 + _EPS)
    ab1 = jnp.sum(a1 * b1, -1)
    cos1 = ab1 / (a1l1 * b1l1 + _EPS)
    sin1 = jnp.sqrt(1.0 - cos1 ** 2 + _EPS)
    cb1 = b1 - a1 * (ab1 / (a1l2 + _EPS))[:, None]
    cb1l1 = b1l1 * sin1
    a2, b2 = v1 - v0, v3 - v0
    a2l2, b2l2 = jnp.sum(a2 * a2, -1), jnp.sum(b2 * b2, -1)
    a2l1, b2l1 = jnp.sqrt(a2l2 + _EPS), jnp.sqrt(b2l2 + _EPS)
    ab2 = jnp.sum(a2 * b2, -1)
    cos2 = ab2 / (a2l1 * b2l1 + _EPS)
    sin2 = jnp.sqrt(1.0 - cos2 ** 2 + _EPS)
    cb2 = b2 - a2 * (ab2 / (a2l2 + _EPS))[:, None]
    cb2l1 = b2l1 * sin2
    cosv = jnp.sum(cb1 * cb2, -1) / (cb1l1 * cb2l1 + _EPS)
    flat_loss = jnp.sum((cosv + 1.0) ** 2)
    return x, lap_loss, flat_loss


if __name__ == "__main__":
    key = jax.random.PRNGKey(0)
    k_mesh, k_disp, k_ctr = jax.random.split(key, 3)

    # Template mesh (stands in for sr.Mesh.from_obj): icosahedron, NV=12, NF=20.
    # TODO(synk): textures buffer / sr.Mesh object construction has no Pallas
    # equivalent; batched (vertices, faces) arrays are returned instead.
    template_verts, faces_np = build_icosahedron(k_mesh)
    nv, nf = template_verts.shape[0], faces_np.shape[0]

    verts_half_np = (template_verts * 0.5).astype(np.float32)
    vertices = jnp.asarray(verts_half_np)                     # buffer 'vertices'
    faces = jnp.asarray(faces_np, jnp.int32)

    # Parameters (deterministic small random values; torch __init__ uses zeros).
    displace = 0.1 * jax.random.normal(k_disp, (nv, 3), jnp.float32)   # (NV, 3)
    center = 0.1 * jax.random.normal(k_ctr, (1, 3), jnp.float32)       # torch (1,1,3) squeezed

    # Loss precomputation (host-side numpy, like the torch modules' __init__).
    laplacian_np = build_laplacian(nv, faces_np)
    m_stacked_np, (v0i, v1i, v2i, v3i), ne = build_stacked_matrix(laplacian_np, faces_np)
    m_stacked = jnp.asarray(m_stacked_np)                     # (128, 512)
    packed_const = build_packed_const(verts_half_np, nv)      # (32, 128)

    batch_size = 2
    verts_b, faces_b, lap_loss, flat_loss = model_forward(
        packed_const, displace, center, m_stacked, faces,
        nv=nv, ne=ne, batch_size=batch_size)
    jax.block_until_ready((verts_b, faces_b, lap_loss, flat_loss))

    # Correctness check vs. pure-JAX reference (torch-exact formulas).
    ref_v, ref_lap, ref_flat = reference_forward(
        vertices, displace, center, jnp.asarray(laplacian_np),
        jnp.asarray(v0i), jnp.asarray(v1i), jnp.asarray(v2i), jnp.asarray(v3i))

    assert verts_b.shape == (batch_size, nv, 3) and faces_b.shape == (batch_size, nf, 3)
    np.testing.assert_allclose(np.asarray(verts_b[0]), np.asarray(ref_v), rtol=1e-5, atol=1e-5)
    np.testing.assert_allclose(np.asarray(verts_b[1]), np.asarray(ref_v), rtol=1e-5, atol=1e-5)
    # HIGHEST-precision MXU + exact rsqrt/divide: remaining deltas are only the
    # fused epsilon placement and a few ulps of transcendental rounding.
    np.testing.assert_allclose(float(lap_loss), float(ref_lap), rtol=1e-3, atol=1e-5)
    np.testing.assert_allclose(float(flat_loss), float(ref_flat), rtol=1e-3, atol=1e-5)

    print("KERNEL_OK")
</pallas_src>

<mosaic_0001>
module attributes {stable_mosaic.version = 11 : i64} {
  func.func @_deform_losses_kernel(%arg0: memref<32x128xf32, #tpu.memory_space<vmem>>, %arg1: memref<128x512xf32, #tpu.memory_space<vmem>>, %arg2: memref<8x128xf32, #tpu.memory_space<vmem>>, %arg3: memref<2xf32, #tpu.memory_space<smem>>) attributes {dimension_semantics = [], scalar_prefetch = 0 : i64, scratch_operands = 0 : i64, tpu.core_type = #tpu.core_type<tc>} {
    %c0 = arith.constant 0 : index
    %c0_0 = arith.constant 0 : index
    %0 = vector.load %arg0[%c0, %c0_0] : memref<32x128xf32, #tpu.memory_space<vmem>>, vector<32x128xf32>
    %1 = vector.extract_strided_slice %0 {offsets = [0, 0], sizes = [8, 128], strides = [1, 1]} : vector<32x128xf32> to vector<8x128xf32>
    %2 = vector.extract_strided_slice %0 {offsets = [8, 0], sizes = [8, 128], strides = [1, 1]} : vector<32x128xf32> to vector<8x128xf32>
    %3 = vector.extract_strided_slice %0 {offsets = [16, 0], sizes = [8, 128], strides = [1, 1]} : vector<32x128xf32> to vector<8x128xf32>
    %4 = vector.extract_strided_slice %0 {offsets = [24, 0], sizes = [8, 128], strides = [1, 1]} : vector<32x128xf32> to vector<8x128xf32>
    %5 = math.tanh %4 : vector<8x128xf32>
    %6 = arith.addf %1, %3 : vector<8x128xf32>
    %7 = arith.negf %6 : vector<8x128xf32>
    %8 = math.exp %7 : vector<8x128xf32>
    %cst = arith.constant 1.000000e+00 : f32
    %9 = vector.broadcast %cst : f32 to vector<8x128xf32>
    %10 = arith.addf %9, %8 : vector<8x128xf32>
    %11 = arith.divf %9, %10 : vector<8x128xf32>
    %12 = arith.mulf %11, %2 : vector<8x128xf32>
    %cst_1 = arith.constant 0.000000e+00 : f32
    %13 = vector.broadcast %cst_1 : f32 to vector<8x128xf32>
    %14 = arith.maximumf %12, %13 : vector<8x128xf32>
    %cst_2 = arith.constant 1.000000e+00 : f32
    %15 = vector.broadcast %cst_2 : f32 to vector<8x128xf32>
    %16 = arith.subf %15, %5 : vector<8x128xf32>
    %17 = arith.mulf %14, %16 : vector<8x128xf32>
    %cst_3 = arith.constant 0.000000e+00 : f32
    %18 = vector.broadcast %cst_3 : f32 to vector<8x128xf32>
    %19 = arith.subf %18, %12 : vector<8x128xf32>
    %cst_4 = arith.constant 0.000000e+00 : f32
    %20 = vector.broadcast %cst_4 : f32 to vector<8x128xf32>
    %21 = arith.maximumf %19, %20 : vector<8x128xf32>
    %cst_5 = arith.constant 1.000000e+00 : f32
    %22 = vector.broadcast %cst_5 : f32 to vector<8x128xf32>
    %23 = arith.addf %5, %22 : vector<8x128xf32>
    %24 = arith.mulf %21, %23 : vector<8x128xf32>
    %25 = arith.subf %17, %24 : vector<8x128xf32>
    %26 = arith.addf %25, %5 : vector<8x128xf32>
    %cst_6 = arith.constant 2.000000e+00 : f32
    %27 = vector.broadcast %cst_6 : f32 to vector<8x128xf32>
    %28 = arith.mulf %26, %27 : vector<8x128xf32>
    %c0_7 = arith.constant 0 : index
    %c0_8 = arith.constant 0 : index
    %29 = vector.load %arg2[%c0_7, %c0_8] : memref<8x128xf32, #tpu.memory_space<vmem>>, vector<8x128xf32>
    tpu.vector_store %arg2[%c0_7, %c0_8], %28 {strides = array<i32>} : memref<8x128xf32, #tpu.memory_space<vmem>>, vector<8x128xf32>,
    %c0_9 = arith.constant 0 : index
    %c0_10 = arith.constant 0 : index
    %30 = vector.load %arg1[%c0_9, %c0_10] : memref<128x512xf32, #tpu.memory_space<vmem>>, vector<128x512xf32>
    %cst_11 = arith.constant dense<0.000000e+00> : vector<8x512xf32>
    %31 = tpu.matmul %28, %30, %cst_11 {dimension_numbers = #tpu.dot_dimension_numbers<[1], [0], [0], [1], [0, 0, 1, 1], [], []>, precision = #tpu.contract_precision<fp32>} : vector<8x128xf32>, vector<128x512xf32>, vector<8x512xf32> -> vector<8x512xf32>
    %32 = vector.extract_strided_slice %31 {offsets = [0, 0], sizes = [8, 128], strides = [1, 1]} : vector<8x512xf32> to vector<8x128xf32>
    %33 = vector.extract_strided_slice %31 {offsets = [0, 128], sizes = [8, 128], strides = [1, 1]} : vector<8x512xf32> to vector<8x128xf32>
    %34 = vector.extract_strided_slice %31 {offsets = [0, 256], sizes = [8, 128], strides = [1, 1]} : vector<8x512xf32> to vector<8x128xf32>
    %35 = vector.extract_strided_slice %31 {offsets = [0, 384], sizes = [8, 128], strides = [1, 1]} : vector<8x512xf32> to vector<8x128xf32>
    %36 = vector.extract_strided_slice %32 {offsets = [0, 0], sizes = [1, 128], strides = [1, 1]} : vector<8x128xf32> to vector<1x128xf32>
    %37 = vector.extract_strided_slice %32 {offsets = [0, 0], sizes = [1, 128], strides = [1, 1]} : vector<8x128xf32> to vector<1x128xf32>
    %38 = arith.mulf %36, %37 : vector<1x128xf32>
    %39 = vector.extract_strided_slice %32 {offsets = [1, 0], sizes = [1, 128], strides = [1, 1]} : vector<8x128xf32> to vector<1x128xf32>
    %40 = vector.extract_strided_slice %32 {offsets = [1, 0], sizes = [1, 128], strides = [1, 1]} : vector<8x128xf32> to vector<1x128xf32>
    %41 = arith.mulf %39, %40 : vector<1x128xf32>
    %42 = arith.addf %38, %41 : vector<1x128xf32>
    %43 = vector.extract_strided_slice %32 {offsets = [2, 0], sizes = [1, 128], strides = [1, 1]} : vector<8x128xf32> to vector<1x128xf32>
    %44 = vector.extract_strided_slice %32 {offsets = [2, 0], sizes = [1, 128], strides = [1, 1]} : vector<8x128xf32> to vector<1x128xf32>
    %45 = arith.mulf %43, %44 : vector<1x128xf32>
    %46 = arith.addf %42, %45 : vector<1x128xf32>
    %47 = vector.extract_strided_slice %33 {offsets = [0, 0], sizes = [1, 128], strides = [1, 1]} : vector<8x128xf32> to vector<1x128xf32>
    %48 = vector.extract_strided_slice %33 {offsets = [0, 0], sizes = [1, 128], strides = [1, 1]} : vector<8x128xf32> to vector<1x128xf32>
    %49 = arith.mulf %47, %48 : vector<1x128xf32>
    %50 = vector.extract_strided_slice %33 {offsets = [1, 0], sizes = [1, 128], strides = [1, 1]} : vector<8x128xf32> to vector<1x128xf32>
    %51 = vector.extract_strided_slice %33 {offsets = [1, 0], sizes = [1, 128], strides = [1, 1]} : vector<8x128xf32> to vector<1x128xf32>
    %52 = arith.mulf %50, %51 : vector<1x128xf32>
    %53 = arith.addf %49, %52 : vector<1x128xf32>
    %54 = vector.extract_strided_slice %33 {offsets = [2, 0], sizes = [1, 128], strides = [1, 1]} : vector<8x128xf32> to vector<1x128xf32>
    %55 = vector.extract_strided_slice %33 {offsets = [2, 0], sizes = [1, 128], strides = [1, 1]} : vector<8x128xf32> to vector<1x128xf32>
    %56 = arith.mulf %54, %55 : vector<1x128xf32>
    %57 = arith.addf %53, %56 : vector<1x128xf32>
    %58 = vector.extract_strided_slice %34 {offsets = [0, 0], sizes = [1, 128], strides = [1, 1]} : vector<8x128xf32> to vector<1x128xf32>
    %59 = vector.extract_strided_slice %34 {offsets = [0, 0], sizes = [1, 128], strides = [1, 1]} : vector<8x128xf32> to vector<1x128xf32>
    %60 = arith.mulf %58, %59 : vector<1x128xf32>
    %61 = vector.extract_strided_slice %34 {offsets = [1, 0], sizes = [1, 128], strides = [1, 1]} : vector<8x128xf32> to vector<1x128xf32>
    %62 = vector.extract_strided_slice %34 {offsets = [1, 0], sizes = [1, 128], strides = [1, 1]} : vector<8x128xf32> to vector<1x128xf32>
    %63 = arith.mulf %61, %62 : vector<1x128xf32>
    %64 = arith.addf %60, %63 : vector<1x128xf32>
    %65 = vector.extract_strided_slice %34 {offsets = [2, 0], sizes = [1, 128], strides = [1, 1]} : vector<8x128xf32> to vector<1x128xf32>
    %66 = vector.extract_strided_slice %34 {offsets = [2, 0], sizes = [1, 128], strides = [1, 1]} : vector<8x128xf32> to vector<1x128xf32>
    %67 = arith.mulf %65, %66 : vector<1x128xf32>
    %68 = arith.addf %64, %67 : vector<1x128xf32>
    %69 = vector.extract_strided_slice %35 {offsets = [0, 0], sizes = [1, 128], strides = [1, 1]} : vector<8x128xf32> to vector<1x128xf32>
    %70 = vector.extract_strided_slice %35 {offsets = [0, 0], sizes = [1, 128], strides = [1, 1]} : vector<8x128xf32> to vector<1x128xf32>
    %71 = arith.mulf %69, %70 : vector<1x128xf32>
    %72 = vector.extract_strided_slice %35 {offsets = [1, 0], sizes = [1, 128], strides = [1, 1]} : vector<8x128xf32> to vector<1x128xf32>
    %73 = vector.extract_strided_slice %35 {offsets = [1, 0], sizes = [1, 128], strides = [1, 1]} : vector<8x128xf32> to vector<1x128xf32>
    %74 = arith.mulf %72, %73 : vector<1x128xf32>
    %75 = arith.addf %71, %74 : vector<1x128xf32>
    %76 = vector.extract_strided_slice %35 {offsets = [2, 0], sizes = [1, 128], strides = [1, 1]} : vector<8x128xf32> to vector<1x128xf32>
    %77 = vector.extract_strided_slice %35 {offsets = [2, 0], sizes = [1, 128], strides = [1, 1]} : vector<8x128xf32> to vector<1x128xf32>
    %78 = arith.mulf %76, %77 : vector<1x128xf32>
    %79 = arith.addf %75, %78 : vector<1x128xf32>
    %80 = vector.extract_strided_slice %33 {offsets = [0, 0], sizes = [1, 128], strides = [1, 1]} : vector<8x128xf32> to vector<1x128xf32>
    %81 = vector.extract_strided_slice %34 {offsets = [0, 0], sizes = [1, 128], strides = [1, 1]} : vector<8x128xf32> to vector<1x128xf32>
    %82 = arith.mulf %80, %81 : vector<1x128xf32>
    %83 = vector.extract_strided_slice %33 {offsets = [1, 0], sizes = [1, 128], strides = [1, 1]} : vector<8x128xf32> to vector<1x128xf32>
    %84 = vector.extract_strided_slice %34 {offsets = [1, 0], sizes = [1, 128], strides = [1, 1]} : vector<8x128xf32> to vector<1x128xf32>
    %85 = arith.mulf %83, %84 : vector<1x128xf32>
    %86 = arith.addf %82, %85 : vector<1x128xf32>
    %87 = vector.extract_strided_slice %33 {offsets = [2, 0], sizes = [1, 128], strides = [1, 1]} : vector<8x128xf32> to vector<1x128xf32>
    %88 = vector.extract_strided_slice %34 {offsets = [2, 0], sizes = [1, 128], strides = [1, 1]} : vector<8x128xf32> to vector<1x128xf32>
    %89 = arith.mulf %87, %88 : vector<1x128xf32>
    %90 = arith.addf %86, %89 : vector<1x128xf32>
    %91 = vector.extract_strided_slice %33 {offsets = [0, 0], sizes = [1, 128], strides = [1, 1]} : vector<8x128xf32> to vector<1x128xf32>
    %92 = vector.extract_strided_slice %35 {offsets = [0, 0], sizes = [1, 128], strides = [1, 1]} : vector<8x128xf32> to vector<1x128xf32>
    %93 = arith.mulf %91, %92 : vector<1x128xf32>
    %94 = vector.extract_strided_slice %33 {offsets = [1, 0], sizes = [1, 128], strides = [1, 1]} : vector<8x128xf32> to vector<1x128xf32>
    %95 = vector.extract_strided_slice %35 {offsets = [1, 0], sizes = [1, 128], strides = [1, 1]} : vector<8x128xf32> to vector<1x128xf32>
    %96 = arith.mulf %94, %95 : vector<1x128xf32>
    %97 = arith.addf %93, %96 : vector<1x128xf32>
    %98 = vector.extract_strided_slice %33 {offsets = [2, 0], sizes = [1, 128], strides = [1, 1]} : vector<8x128xf32> to vector<1x128xf32>
    %99 = vector.extract_strided_slice %35 {offsets = [2, 0], sizes = [1, 128], strides = [1, 1]} : vector<8x128xf32> to vector<1x128xf32>
    %100 = arith.mulf %98, %99 : vector<1x128xf32>
    %101 = arith.addf %97, %100 : vector<1x128xf32>
    %cst_12 = arith.constant 9.99999997E-7 : f32
    %102 = vector.broadcast %cst_12 : f32 to vector<1x128xf32>
    %103 = arith.addf %57, %102 : vector<1x128xf32>
    %cst_13 = arith.constant 9.99999997E-7 : f32
    %104 = vector.broadcast %cst_13 : f32 to vector<1x128xf32>
    %105 = arith.addf %68, %104 : vector<1x128xf32>
    %106 = arith.mulf %103, %105 : vector<1x128xf32>
    %107 = math.rsqrt %106 : vector<1x128xf32>
    %108 = arith.mulf %90, %107 : vector<1x128xf32>
    %cst_14 = arith.constant 9.99999997E-7 : f32
    %109 = vector.broadcast %cst_14 : f32 to vector<1x128xf32>
    %110 = arith.addf %57, %109 : vector<1x128xf32>
    %cst_15 = arith.constant 9.99999997E-7 : f32
    %111 = vector.broadcast %cst_15 : f32 to vector<1x128xf32>
    %112 = arith.addf %79, %111 : vector<1x128xf32>
    %113 = arith.mulf %110, %112 : vector<1x128xf32>
    %114 = math.rsqrt %113 : vector<1x128xf32>
    %115 = arith.mulf %101, %114 : vector<1x128xf32>
    %cst_16 = arith.constant 9.99999997E-7 : f32
    %116 = vector.broadcast %cst_16 : f32 to vector<1x128xf32>
    %117 = arith.addf %57, %116 : vector<1x128xf32>
    %cst_17 = arith.constant 1.000000e+00 : f32
    %118 = vector.broadcast %cst_17 : f32 to vector<1x128xf32>
    %119 = arith.divf %118, %117 : vector<1x128xf32>
    %120 = arith.mulf %90, %119 : vector<1x128xf32>
    %121 = vector.broadcast %120 : vector<1x128xf32> to vector<8x128xf32>
    %122 = arith.mulf %33, %121 : vector<8x128xf32>
    %123 = arith.subf %34, %122 : vector<8x128xf32>
    %124 = arith.mulf %101, %119 : vector<1x128xf32>
    %125 = vector.broadcast %124 : vector<1x128xf32> to vector<8x128xf32>
    %126 = arith.mulf %33, %125 : vector<8x128xf32>
    %127 = arith.subf %35, %126 : vector<8x128xf32>
    %cst_18 = arith.constant 9.99999997E-7 : f32
    %128 = vector.broadcast %cst_18 : f32 to vector<1x128xf32>
    %129 = arith.addf %68, %128 : vector<1x128xf32>
    %cst_19 = arith.constant 9.99999997E-7 : f32
    %130 = vector.broadcast %cst_19 : f32 to vector<1x128xf32>
    %131 = arith.addf %79, %130 : vector<1x128xf32>
    %132 = arith.mulf %129, %131 : vector<1x128xf32>
    %133 = arith.mulf %108, %108 : vector<1x128xf32>
    %cst_20 = arith.constant 1.000000e+00 : f32
    %134 = vector.broadcast %cst_20 : f32 to vector<1x128xf32>
    %135 = arith.subf %134, %133 : vector<1x128xf32>
    %cst_21 = arith.constant 9.99999997E-7 : f32
    %136 = vector.broadcast %cst_21 : f32 to vector<1x128xf32>
    %137 = arith.addf %135, %136 : vector<1x128xf32>
    %138 = arith.mulf %132, %137 : vector<1x128xf32>
    %139 = arith.mulf %115, %115 : vector<1x128xf32>
    %cst_22 = arith.constant 1.000000e+00 : f32
    %140 = vector.broadcast %cst_22 : f32 to vector<1x128xf32>
    %141 = arith.subf %140, %139 : vector<1x128xf32>
    %cst_23 = arith.constant 9.99999997E-7 : f32
    %142 = vector.broadcast %cst_23 : f32 to vector<1x128xf32>
    %143 = arith.addf %141, %142 : vector<1x128xf32>
    %144 = arith.mulf %138, %143 : vector<1x128xf32>
    %145 = vector.extract_strided_slice %123 {offsets = [0, 0], sizes = [1, 128], strides = [1, 1]} : vector<8x128xf32> to vector<1x128xf32>
    %146 = vector.extract_strided_slice %127 {offsets = [0, 0], sizes = [1, 128], strides = [1, 1]} : vector<8x128xf32> to vector<1x128xf32>
    %147 = arith.mulf %145, %146 : vector<1x128xf32>
    %148 = vector.extract_strided_slice %123 {offsets = [1, 0], sizes = [1, 128], strides = [1, 1]} : vector<8x128xf32> to vector<1x128xf32>
    %149 = vector.extract_strided_slice %127 {offsets = [1, 0], sizes = [1, 128], strides = [1, 1]} : vector<8x128xf32> to vector<1x128xf32>
    %150 = arith.mulf %148, %149 : vector<1x128xf32>
    %151 = arith.addf %147, %150 : vector<1x128xf32>
    %152 = vector.extract_strided_slice %123 {offsets = [2, 0], sizes = [1, 128], strides = [1, 1]} : vector<8x128xf32> to vector<1x128xf32>
    %153 = vector.extract_strided_slice %127 {offsets = [2, 0], sizes = [1, 128], strides = [1, 1]} : vector<8x128xf32> to vector<1x128xf32>
    %154 = arith.mulf %152, %153 : vector<1x128xf32>
    %155 = arith.addf %151, %154 : vector<1x128xf32>
    %156 = math.rsqrt %144 : vector<1x128xf32>
    %157 = arith.mulf %155, %156 : vector<1x128xf32>
    %158 = tpu.iota {dimensions = array<i32: 1>} : vector<1x128xi32>
    %c25_i32 = arith.constant 25 : i32
    %159 = vector.broadcast %c25_i32 : i32 to vector<1x128xi32>
    %160 = arith.cmpi slt, %158, %159 : vector<1x128xi32>
    %cst_24 = arith.constant 1.000000e+00 : f32
    %161 = vector.broadcast %cst_24 : f32 to vector<1x128xf32>
    %162 = arith.addf %157, %161 : vector<1x128xf32>
    %cst_25 = arith.constant 1.000000e+00 : f32
    %163 = vector.broadcast %cst_25 : f32 to vector<1x128xf32>
    %164 = arith.addf %157, %163 : vector<1x128xf32>
    %165 = arith.mulf %162, %164 : vector<1x128xf32>
    %cst_26 = arith.constant 0.000000e+00 : f32
    %166 = vector.broadcast %cst_26 : f32 to vector<1x128xf32>
    %167 = arith.select %160, %165, %166 : vector<1x128xi1>, vector<1x128xf32>
    %168 = tpu.concatenate %46, %167 in 0 : vector<1x128xf32>, vector<1x128xf32> -> vector<2x128xf32>
    %cst_27 = arith.constant dense<0.000000e+00> : vector<2xf32>
    %169 = vector.multi_reduction <add>, %168, %cst_27 [1] : vector<2x128xf32> to vector<2xf32>
    %170 = vector.shape_cast %169 : vector<2xf32> to vector<2x1xf32>
    %171 = vector.extract_strided_slice %170 {offsets = [0, 0], sizes = [1, 1], strides = [1, 1]} : vector<2x1xf32> to vector<1x1xf32>
    %172 = vector.shape_cast %171 : vector<1x1xf32> to vector<1x1x1xf32>
    %cst_28 = arith.constant dense<0.000000e+00> : vector<1xf32>
    %173 = vector.multi_reduction <add>, %172, %cst_28 [1, 2] : vector<1x1x1xf32> to vector<1xf32>
    %174 = vector.shape_cast %173 : vector<1xf32> to vector<1x1x1xf32>
    %175 = vector.extract %174[0, 0, 0] : f32 from vector<1x1x1xf32>
    %c0_29 = arith.constant 0 : index
    %176 = memref.load %arg3[%c0_29] : memref<2xf32, #tpu.memory_space<smem>>
    memref.store %175, %arg3[%c0_29] : memref<2xf32, #tpu.memory_space<smem>>
    %177 = vector.extract_strided_slice %170 {offsets = [1, 0], sizes = [1, 1], strides = [1, 1]} : vector<2x1xf32> to vector<1x1xf32>
    %178 = vector.shape_cast %177 : vector<1x1xf32> to vector<1x1x1xf32>
    %cst_30 = arith.constant dense<0.000000e+00> : vector<1xf32>
    %179 = vector.multi_reduction <add>, %178, %cst_30 [1, 2] : vector<1x1x1xf32> to vector<1xf32>
    %180 = vector.shape_cast %179 : vector<1xf32> to vector<1x1x1xf32>
    %181 = vector.extract %180[0, 0, 0] : f32 from vector<1x1x1xf32>
    %c1 = arith.constant 1 : index
    %182 = memref.load %arg3[%c1] : memref<2xf32, #tpu.memory_space<smem>>
    memref.store %181, %arg3[%c1] : memref<2xf32, #tpu.memory_space<smem>>
    return
  }
}

</mosaic_0001>

<bundles_post_ra>
// kernel: model_forward.1
= control target key start
LH: loop header
LB: loop body
LE: loop exit
PB: predicated region body
PF: predicated region fallthrough
CT: control target
= control target key end

     0   :  { %9 = vsyncpa [#allocation3], 0  ;;  %s3536_s0 = inlined_call_operand.vmem [shape: f32[32,128], index: 0, kind: input, shape index: {}]   ;;  %s3537_s1 = inlined_call_operand.hbm [shape: f32[128,512], index: 1, kind: input, shape index: {}]   ;;  %s3538_s2 = inlined_call_operand.vmem [shape: f32[8,128], index: 2, kind: output, shape index: {0}]   ;;  %s3539_s3 = inlined_call_operand.vmem [shape: f32[2], index: 3, kind: output, shape index: {1}]  }
   0x1   :  { %10 = vsyncpa [#allocation4], 0  ;;  %s2429_s12 = smov [#allocation2]   ;;  %s2391_s16 = scalar_lea.hbm %s3537_s1, 8192 }
   0x2   :  { %s18_s13 = sshll.u32 %s2429_s12, 4  ;;  %p2392_p0 = scmp.ne.s32.totalorder %s3537_s1, %s2391_s16  ;;  %s19_s13 = int_to_ptr.vmem [resolvable:$true] %s18_s13 }
   0x3   :  { %p2395_p1 = scmp.lt.u32.totalorder %s2391_s16, %s3537_s1 }
   0x5   :  { %p2397_p2 = pnand %p2395_p1, %p2392_p0 }
   0x7   :  { %2400 = shalt.err (!%p2397_p2)
}
   0x8   :  { %s2401_s21 = scalar_lea.vmem %s19_s13, 8192  ;;  %p2406_p4 = scmp.lt.s32.totalorder %s19_s13, %s19_s13 }
   0x9   :  { %p2402_p3 = scmp.ne.s32.totalorder %s19_s13, %s2401_s21  ;;  %p2407_p5 = scmp.lt.s32.totalorder %s2401_s21, %s2401_s21 }
   0xb   :  { %p2408_p6 = por %p2407_p5, %p2406_p4 }
   0xd   :  { %p2409_p7 = pnand %p2408_p6, %p2402_p3 }
   0xf   :  { %2412 = shalt.err (!%p2409_p7)
}
  0x10   :  { %s2430_s22 = smov 512   ;;  %s2431_s23 = smov 32  }
  0x11   :  { %24 = dma.hbm_to_vmem [thread:$0]  %s3537_s1, 8192, %s19_s13, [#allocation3], %s2430_s22, %s2430_s22, %s2431_s23  }
  0x12   :  { %2425 = dma.done.wait [#allocation3], 8192  }
  0x13   :  { %2426 = vsyncadd [#allocation3], 4294959104  ;;  %v3540_v0 = vmov 0.0   ;;  %v53_v1 = vld [vmem:[#allocation2 + $0x8] sm:$0xff]  ;;  %v55_v3 = vld [vmem:[#allocation2 + $0x18] sm:$0xff]  ;;  %vm1927_vm1 = vcmask 1040384  }
  0x14   :  { %212 = vmatprep.mubr.f32.mxu0 %v3540_v0  ;;  %1067 = vmatprep.mubr.f32.mxu1 %v3540_v0  ;;  %v57_v2 = vld [vmem:[#allocation2 + $0x28] sm:$0xff]  ;;  %v116_v4 = vand.u32 4294901760, %v53_v1  ;;  %v59_v6 = vld [vmem:[#allocation2 + $0x38] sm:$0xff]  ;;  %v971_v7 = vand.u32 4294901760, %v55_v3  ;;  %v52_v8 = vld [vmem:[#allocation2] sm:$0xff]  ;;  %vm1929_vm2 = vcmask 1041408  }
  0x15   :  { %v120_v5 = vand.u32 4294901760, %v57_v2  ;;  %v56_v9 = vld [vmem:[#allocation2 + $0x20] sm:$0xff]  ;;  %v975_v10 = vand.u32 4294901760, %v59_v6  ;;  %v118_v11 = vand.u32 4294901760, %v52_v8  ;;  %v54_v13 = vld [vmem:[#allocation2 + $0x10] sm:$0xff]  ;;  %v61_v15 = vld [vmem:[#allocation2 + $0x48] sm:$0xff] }
  0x16   :  { %v122_v12 = vand.u32 4294901760, %v56_v9  ;;  %v58_v14 = vld [vmem:[#allocation2 + $0x30] sm:$0xff]  ;;  %v2470_v17 = vsub.f32 %v53_v1, %v116_v4  ;;  %v2474_v19 = vsub.f32 %v55_v3, %v971_v7  ;;  %v65_v20 = vld [vmem:[#allocation2 + $0x68] sm:$0xff]  ;;  %v63_v21 = vld [vmem:[#allocation2 + $0x58] sm:$0xff]  ;;  %v973_v29 = vand.u32 4294901760, %v54_v13  ;;  %s1951_s8 = sshll.u32 %s3539_s3, 4  ;;  %s1952_s8 = int_to_ptr.vmem [resolvable:$true] %s1951_s8 }
  0x17   :  { %v2468_v16 = vpack.c.bf16 %v120_v5, %v116_v4  ;;  %v2472_v18 = vsub.f32 %v57_v2, %v120_v5  ;;  %v67_v22 = vld [vmem:[#allocation2 + $0x78] sm:$0xff]  ;;  %v2476_v23 = vpack.c.bf16 %v975_v10, %v971_v7  ;;  %v2478_v24 = vsub.f32 %v59_v6, %v975_v10  ;;  %v60_v27 = vld [vmem:[#allocation2 + $0x40] sm:$0xff]  ;;  %v62_v37 = vld [vmem:[#allocation2 + $0x50] sm:$0xff]  ;;  %s2413_s11 = scalar_lea.vmem %s1952_s8, 16  ;;  %p2418_p9 = scmp.lt.s32.totalorder %s1952_s8, %s1952_s8 }
  0x18   :  { %3773 = vst [vmem:[#allocation9_spill] sm:$0xff] %v2470_v17  ;;  %3775 = vst [vmem:[#allocation11_spill] sm:$0xff] %v2474_v19  ;;  %v2480_v25 = vpack.c.bf16 %v122_v12, %v118_v11  ;;  %v2482_v26 = vsub.f32 %v52_v8, %v118_v11  ;;  %v2485_v28 = vsub.f32 %v56_v9, %v122_v12  ;;  %v977_v30 = vand.u32 4294901760, %v58_v14  ;;  %v64_v32 = vld [vmem:[#allocation2 + $0x60] sm:$0xff]  ;;  %v66_v38 = vld [vmem:[#allocation2 + $0x70] sm:$0xff]  ;;  %p2414_p8 = scmp.ne.s32.totalorder %s1952_s8, %s2413_s11  ;;  %p2419_p10 = scmp.lt.s32.totalorder %s2413_s11, %s2413_s11 }
  0x19   :  { %3772 = vst [vmem:[#allocation8_spill] sm:$0xff] %v2468_v16  ;;  %3774 = vst [vmem:[#allocation10_spill] sm:$0xff] %v2472_v18  ;;  %1965 = vmatprep.subr.bf16.mxu0 %v2468_v16  ;;  %v124_v31 = vand.u32 4294901760, %v61_v15  ;;  %2157 = vmatprep.subr.bf16.mxu1 %v2476_v23  ;;  %v128_v33 = vand.u32 4294901760, %v65_v20  ;;  %v979_v34 = vand.u32 4294901760, %v63_v21  ;;  %v983_v35 = vand.u32 4294901760, %v67_v22 }
  0x1a   :  { %3776 = vst [vmem:[#allocation12_spill] sm:$0xff] %v2476_v23  ;;  %3777 = vst [vmem:[#allocation13_spill] sm:$0xff] %v2478_v24  ;;  %1967 = vmatpush1.bf16.msra.mxu0 %v2480_v25  ;;  %v126_v36 = vand.u32 4294901760, %v60_v27  ;;  %v2489_v39 = vpack.c.bf16 %v977_v30, %v973_v29  ;;  %v2491_v40 = vsub.f32 %v54_v13, %v973_v29  ;;  %v69_v43 = vld [vmem:[#allocation2 + $0x88] sm:$0xff]  ;;  %v71_v45 = vld [vmem:[#allocation2 + $0x98] sm:$0xff]  ;;  %v130_v52 = vand.u32 4294901760, %v64_v32  ;;  %p2420_p11 = por %p2419_p10, %p2418_p9 }
  0x1b   :  { %3778 = vst [vmem:[#allocation14_spill] sm:$0xff] %v2480_v25  ;;  %3779 = vst [vmem:[#allocation15_spill] sm:$0xff] %v2482_v26  ;;  %v2493_v41 = vsub.f32 %v58_v14, %v977_v30  ;;  %v2495_v42 = vsub.f32 %v61_v15, %v124_v31  ;;  %v73_v44 = vld [vmem:[#allocation2 + $0xa8] sm:$0xff]  ;;  %v2497_v46 = vpack.c.bf16 %v128_v33, %v124_v31  ;;  %v75_v50 = vld [vmem:[#allocation2 + $0xb8] sm:$0xff]  ;;  %v981_v54 = vand.u32 4294901760, %v62_v37 }
  0x1c   :  { %3780 = vst [vmem:[#allocation16_spill] sm:$0xff] %v2485_v28  ;;  %3781 = vst [vmem:[#allocation17_spill] sm:$0xff] %v2489_v39  ;;  %v2499_v47 = vsub.f32 %v65_v20, %v128_v33  ;;  %v2501_v48 = vpack.c.bf16 %v983_v35, %v979_v34  ;;  %v2503_v49 = vsub.f32 %v63_v21, %v979_v34  ;;  %2159 = vmatpush1.bf16.msra.mxu1 %v2489_v39  ;;  %v68_v59 = vld [vmem:[#allocation2 + $0x80] sm:$0xff]  ;;  %v70_v2 = vld [vmem:[#allocation2 + $0x90] sm:$0xff]  ;;  %p2421_p12 = pnand %p2420_p11, %p2414_p8 }
  0x1d   :  { %3782 = vst [vmem:[#allocation18_spill] sm:$0xff] %v2491_v40  ;;  %3783 = vst [vmem:[#allocation19_spill] sm:$0xff] %v2493_v41  ;;  %v2506_v51 = vsub.f32 %v67_v22, %v983_v35  ;;  %v2508_v53 = vsub.f32 %v60_v27, %v126_v36  ;;  %1969 = vmatprep.subr.bf16.mxu0 %v2497_v46  ;;  %v985_v55 = vand.u32 4294901760, %v66_v38  ;;  %v132_v56 = vand.u32 4294901760, %v69_v43  ;;  %v72_v60 = vld [vmem:[#allocation2 + $0xa0] sm:$0xff]  ;;  %v74_v3 = vld [vmem:[#allocation2 + $0xb0] sm:$0xff] }
  0x1e   :  { %3784 = vst [vmem:[#allocation20_spill] sm:$0xff] %v2495_v42  ;;  %3785 = vst [vmem:[#allocation21_spill] sm:$0xff] %v2497_v46  ;;  %2161 = vmatprep.subr.bf16.mxu1 %v2501_v48  ;;  %v136_v57 = vand.u32 4294901760, %v73_v44  ;;  %v987_v58 = vand.u32 4294901760, %v71_v45  ;;  %v2512_v61 = vpack.c.bf16 %v130_v52, %v126_v36  ;;  %v2514_v62 = vsub.f32 %v64_v32, %v130_v52  ;;  %v77_v4 = vld [vmem:[#allocation2 + $0xc8] sm:$0xff]  ;;  %v79_v10 = vld [vmem:[#allocation2 + $0xd8] sm:$0xff] }
  0x1f   :  { %3786 = vst [vmem:[#allocation22_spill] sm:$0xff] %v2501_v48  ;;  %3787 = vst [vmem:[#allocation23_spill] sm:$0xff] %v2503_v49  ;;  %v2516_v63 = vsub.f32 %v62_v37, %v981_v54  ;;  %v991_v1 = vand.u32 4294901760, %v75_v50  ;;  %v2518_v5 = vpack.c.bf16 %v985_v55, %v981_v54  ;;  %v2520_v6 = vsub.f32 %v66_v38, %v985_v55  ;;  %v81_v9 = vld [vmem:[#allocation2 + $0xe8] sm:$0xff]  ;;  %v83_v11 = vld [vmem:[#allocation2 + $0xf8] sm:$0xff] }
  0x20   :  { %3788 = vst [vmem:[#allocation24_spill] sm:$0xff] %v2506_v51  ;;  %3789 = vst [vmem:[#allocation25_spill] sm:$0xff] %v2508_v53  ;;  %v2522_v7 = vpack.c.bf16 %v136_v57, %v132_v56  ;;  %v2524_v8 = vsub.f32 %v69_v43, %v132_v56  ;;  %1971 = vmatpush1.bf16.msra.mxu0 %v2512_v61  ;;  %v2527_v12 = vsub.f32 %v73_v44, %v136_v57  ;;  %v76_v33 = vld [vmem:[#allocation2 + $0xc0] sm:$0xff]  ;;  %v78_v43 = vld [vmem:[#allocation2 + $0xd0] sm:$0xff] }
  0x21   :  { %3790 = vst [vmem:[#allocation26_spill] sm:$0xff] %v2512_v61  ;;  %3791 = vst [vmem:[#allocation27_spill] sm:$0xff] %v2514_v62  ;;  %v2529_v13 = vpack.c.bf16 %v991_v1, %v987_v58  ;;  %v2531_v14 = vsub.f32 %v71_v45, %v987_v58  ;;  %v2533_v15 = vsub.f32 %v75_v50, %v991_v1  ;;  %2163 = vmatpush1.bf16.msra.mxu1 %v2518_v5  ;;  %v80_v38 = vld [vmem:[#allocation2 + $0xe0] sm:$0xff]  ;;  %v82_v44 = vld [vmem:[#allocation2 + $0xf0] sm:$0xff] }
  0x22   :  { %3792 = vst [vmem:[#allocation28_spill] sm:$0xff] %v2516_v63  ;;  %3793 = vst [vmem:[#allocation29_spill] sm:$0xff] %v2518_v5  ;;  %1973 = vmatprep.subr.bf16.mxu0 %v2522_v7  ;;  %v134_v20 = vand.u32 4294901760, %v68_v59  ;;  %v138_v21 = vand.u32 4294901760, %v72_v60  ;;  %v989_v22 = vand.u32 4294901760, %v70_v2  ;;  %v993_v27 = vand.u32 4294901760, %v74_v3 }
  0x23   :  { %3794 = vst [vmem:[#allocation30_spill] sm:$0xff] %v2520_v6  ;;  %3795 = vst [vmem:[#allocation31_spill] sm:$0xff] %v2522_v7  ;;  %2165 = vmatprep.subr.bf16.mxu1 %v2529_v13  ;;  %v140_v29 = vand.u32 4294901760, %v77_v4  ;;  %v144_v30 = vand.u32 4294901760, %v81_v9  ;;  %v995_v31 = vand.u32 4294901760, %v79_v10  ;;  %v999_v32 = vand.u32 4294901760, %v83_v11 }
  0x24   :  { %3796 = vst [vmem:[#allocation32_spill] sm:$0xff] %v2524_v8  ;;  %3797 = vst [vmem:[#allocation33_spill] sm:$0xff] %v2527_v12  ;;  %v2538_v34 = vpack.c.bf16 %v138_v21, %v134_v20  ;;  %v2540_v35 = vsub.f32 %v68_v59, %v134_v20  ;;  %v2542_v36 = vsub.f32 %v72_v60, %v138_v21  ;;  %v85_v55 = vld [vmem:[#allocation2 + $0x108] sm:$0xff]  ;;  %v87_v57 = vld [vmem:[#allocation2 + $0x118] sm:$0xff]  ;;  %v142_v1 = vand.u32 4294901760, %v76_v33 }
  0x25   :  { %3798 = vst [vmem:[#allocation34_spill] sm:$0xff] %v2529_v13  ;;  %3799 = vst [vmem:[#allocation35_spill] sm:$0xff] %v2531_v14  ;;  %v2544_v37 = vpack.c.bf16 %v993_v27, %v989_v22  ;;  %v2546_v45 = vsub.f32 %v70_v2, %v989_v22  ;;  %v2548_v50 = vsub.f32 %v74_v3, %v993_v27  ;;  %v89_v56 = vld [vmem:[#allocation2 + $0x128] sm:$0xff]  ;;  %v146_v3 = vand.u32 4294901760, %v80_v38  ;;  %v91_v21 = vld [vmem:[#allocation2 + $0x138] sm:$0xff] }
  0x26   :  { %3800 = vst [vmem:[#allocation36_spill] sm:$0xff] %v2533_v15  ;;  %3801 = vst [vmem:[#allocation37_spill] sm:$0xff] %v2538_v34  ;;  %v2550_v52 = vpack.c.bf16 %v144_v30, %v140_v29  ;;  %v2552_v54 = vsub.f32 %v77_v4, %v140_v29  ;;  %1975 = vmatpush1.bf16.msra.mxu0 %v2538_v34  ;;  %v2556_v58 = vsub.f32 %v81_v9, %v144_v30  ;;  %v84_v30 = vld [vmem:[#allocation2 + $0x100] sm:$0xff]  ;;  %v93_v34 = vld [vmem:[#allocation2 + $0x148] sm:$0xff] }
  0x27   :  { %3802 = vst [vmem:[#allocation38_spill] sm:$0xff] %v2540_v35  ;;  %3803 = vst [vmem:[#allocation39_spill] sm:$0xff] %v2544_v37  ;;  %2167 = vmatpush1.bf16.msra.mxu1 %v2544_v37  ;;  %v2558_v59 = vpack.c.bf16 %v999_v32, %v995_v31  ;;  %v2560_v60 = vsub.f32 %v79_v10, %v995_v31  ;;  %v2563_v2 = vsub.f32 %v83_v11, %v999_v32  ;;  %v88_v0 = vld [vmem:[#allocation2 + $0x120] sm:$0xff]  ;;  %v86_v10 = vld [vmem:[#allocation2 + $0x110] sm:$0xff] }
  0x28   :  { %3804 = vst [vmem:[#allocation40_spill] sm:$0xff] %v2550_v52  ;;  %3805 = vst [vmem:[#allocation41_spill] sm:$0xff] %v2556_v58  ;;  %1977 = vmatprep.subr.bf16.mxu0 %v2550_v52  ;;  %v997_v4 = vand.u32 4294901760, %v78_v43  ;;  %v1001_v20 = vand.u32 4294901760, %v82_v44  ;;  %v2566_v22 = vsub.f32 %v76_v33, %v142_v1  ;;  %v148_v27 = vand.u32 4294901760, %v85_v55  ;;  %v90_v52 = vld [vmem:[#allocation2 + $0x130] sm:$0xff] }
  0x29   :  { %3806 = vst [vmem:[#allocation42_spill] sm:$0xff] %v2558_v59  ;;  %3807 = vst [vmem:[#allocation43_spill] sm:$0xff] %v2560_v60  ;;  %2169 = vmatprep.subr.bf16.mxu1 %v2558_v59  ;;  %v152_v9 = vand.u32 4294901760, %v89_v56  ;;  %v1003_v29 = vand.u32 4294901760, %v87_v57  ;;  %v2568_v31 = vpack.c.bf16 %v146_v3, %v142_v1  ;;  %v2570_v37 = vsub.f32 %v80_v38, %v146_v3  ;;  %v97_v13 = vld [vmem:[#allocation2 + $0x168] sm:$0xff]  ;;  %v95_v48 = vld [vmem:[#allocation2 + $0x158] sm:$0xff] }
  0x2a   :  { %3808 = vst [vmem:[#allocation44_spill] sm:$0xff] %v2563_v2  ;;  %3809 = vst [vmem:[#allocation45_spill] sm:$0xff] %v2566_v22  ;;  %v2572_v11 = vpack.c.bf16 %v1001_v20, %v997_v4  ;;  %v2574_v32 = vsub.f32 %v78_v43, %v997_v4  ;;  %v2576_v59 = vsub.f32 %v82_v44, %v1001_v20  ;;  %v1007_v38 = vand.u32 4294901760, %v91_v21  ;;  %v94_v46 = vld [vmem:[#allocation2 + $0x150] sm:$0xff] }
  0x2b   :  { %3810 = vst [vmem:[#allocation46_spill] sm:$0xff] %v2568_v31  ;;  %3811 = vst [vmem:[#allocation47_spill] sm:$0xff] %v2570_v37  ;;  %v2578_v33 = vpack.c.bf16 %v152_v9, %v148_v27  ;;  %v2580_v7 = vsub.f32 %v85_v55, %v148_v27  ;;  %v2582_v5 = vsub.f32 %v89_v56, %v152_v9  ;;  %1979 = vmatpush1.bf16.msra.mxu0 %v2568_v31  ;;  %v99_v55 = vld [vmem:[#allocation2 + $0x178] sm:$0xff]  ;;  %v96_v31 = vld [vmem:[#allocation2 + $0x160] sm:$0xff] }
  0x2c   :  { %3812 = vst [vmem:[#allocation48_spill] sm:$0xff] %v2572_v11  ;;  %3813 = vst [vmem:[#allocation49_spill] sm:$0xff] %v2574_v32  ;;  %2171 = vmatpush1.bf16.msra.mxu1 %v2572_v11  ;;  %v2586_v1 = vsub.f32 %v87_v57, %v1003_v29  ;;  %v150_v43 = vand.u32 4294901760, %v84_v30  ;;  %v154_v3 = vand.u32 4294901760, %v88_v0  ;;  %v1005_v4 = vand.u32 4294901760, %v86_v10  ;;  %v92_v57 = vld [vmem:[#allocation2 + $0x140] sm:$0xff] }
  0x2d   :  { %3814 = vst [vmem:[#allocation50_spill] sm:$0xff] %v2576_v59  ;;  %3815 = vst [vmem:[#allocation51_spill] sm:$0xff] %v2578_v33  ;;  %1981 = vmatprep.subr.bf16.mxu0 %v2578_v33  ;;  %v1009_v44 = vand.u32 4294901760, %v90_v52  ;;  %v156_v20 = vand.u32 4294901760, %v93_v34  ;;  %v160_v61 = vand.u32 4294901760, %v97_v13  ;;  %v2589_v27 = vpack.c.bf16 %v1007_v38, %v1003_v29  ;;  %v98_v16 = vld [vmem:[#allocation2 + $0x170] sm:$0xff] }
  0x2e   :  { %3816 = vst [vmem:[#allocation52_spill] sm:$0xff] %v2580_v7  ;;  %3817 = vst [vmem:[#allocation53_spill] sm:$0xff] %v2582_v5  ;;  %v2591_v56 = vsub.f32 %v91_v21, %v1007_v38  ;;  %v2593_v9 = vpack.c.bf16 %v154_v3, %v150_v43  ;;  %v2595_v11 = vsub.f32 %v84_v30, %v150_v43  ;;  %v101_v29 = vld [vmem:[#allocation2 + $0x188] sm:$0xff]  ;;  %v158_v43 = vand.u32 4294901760, %v92_v57 }
  0x2f   :  { %3818 = vst [vmem:[#allocation54_spill] sm:$0xff] %v2586_v1  ;;  %3819 = vst [vmem:[#allocation55_spill] sm:$0xff] %v2589_v27  ;;  %v2597_v39 = vsub.f32 %v88_v0, %v154_v3  ;;  %v2599_v33 = vpack.c.bf16 %v1009_v44, %v1005_v4  ;;  %v2601_v25 = vsub.f32 %v86_v10, %v1005_v4  ;;  %v105_v1 = vld [vmem:[#allocation2 + $0x1a8] sm:$0xff]  ;;  %2173 = vmatprep.subr.bf16.mxu1 %v2589_v27 }
  0x30   :  { %3820 = vst [vmem:[#allocation56_spill] sm:$0xff] %v2591_v56  ;;  %3821 = vst [vmem:[#allocation57_spill] sm:$0xff] %v2593_v9  ;;  %v2603_v23 = vsub.f32 %v90_v52, %v1009_v44  ;;  %1983 = vmatpush1.bf16.msra.mxu0 %v2593_v9  ;;  %v2607_v21 = vpack.c.bf16 %v160_v61, %v156_v20  ;;  %v2609_v30 = vsub.f32 %v93_v34, %v156_v20  ;;  %v113_v56 = vld [vmem:[#allocation2 + $0x1e8] sm:$0xff] }
  0x31   :  { %3822 = vst [vmem:[#allocation58_spill] sm:$0xff] %v2595_v11  ;;  %3823 = vst [vmem:[#allocation59_spill] sm:$0xff] %v2597_v39  ;;  %v2611_v38 = vsub.f32 %v97_v13, %v160_v61  ;;  %v1011_v0 = vand.u32 4294901760, %v95_v48  ;;  %2175 = vmatpush1.bf16.msra.mxu1 %v2599_v33  ;;  %v1015_v10 = vand.u32 4294901760, %v99_v55  ;;  %v162_v52 = vand.u32 4294901760, %v96_v31  ;;  %v106_v11 = vld [vmem:[#allocation2 + $0x1b0] sm:$0xff] }
  0x32   :  { %3824 = vst [vmem:[#allocation60_spill] sm:$0xff] %v2599_v33  ;;  %3825 = vst [vmem:[#allocation61_spill] sm:$0xff] %v2601_v25  ;;  %v1013_v3 = vand.u32 4294901760, %v94_v46  ;;  %1985 = vmatprep.subr.bf16.mxu0 %v2607_v21  ;;  %v1017_v44 = vand.u32 4294901760, %v98_v16  ;;  %v164_v27 = vand.u32 4294901760, %v101_v29  ;;  %v168_v9 = vand.u32 4294901760, %v105_v1 }
  0x33   :  { %3826 = vst [vmem:[#allocation62_spill] sm:$0xff] %v2603_v23  ;;  %3827 = vst [vmem:[#allocation63_spill] sm:$0xff] %v2607_v21  ;;  %v2615_v4 = vsub.f32 %v95_v48, %v1011_v0  ;;  %v103_v23 = vld [vmem:[#allocation2 + $0x198] sm:$0xff]  ;;  %v2617_v34 = vpack.c.bf16 %v1015_v10, %v1011_v0  ;;  %v2619_v61 = vsub.f32 %v99_v55, %v1015_v10  ;;  %v100_v33 = vld [vmem:[#allocation2 + $0x180] sm:$0xff] }
  0x34   :  { %3828 = vst [vmem:[#allocation64_spill] sm:$0xff] %v2609_v30  ;;  %3829 = vst [vmem:[#allocation65_spill] sm:$0xff] %v2611_v38  ;;  %v107_v25 = vld [vmem:[#allocation2 + $0x1b8] sm:$0xff]  ;;  %v2621_v13 = vpack.c.bf16 %v162_v52, %v158_v43  ;;  %v2623_v20 = vsub.f32 %v92_v57, %v158_v43  ;;  %v104_v38 = vld [vmem:[#allocation2 + $0x1a0] sm:$0xff]  ;;  %v2625_v39 = vsub.f32 %v96_v31, %v162_v52  ;;  %v1019_v31 = vand.u32 4294901760, %v103_v23 }
  0x35   :  { %3830 = vst [vmem:[#allocation66_spill] sm:$0xff] %v2615_v4  ;;  %3831 = vst [vmem:[#allocation67_spill] sm:$0xff] %v2617_v34  ;;  %v102_v30 = vld [vmem:[#allocation2 + $0x190] sm:$0xff]  ;;  %v2627_v48 = vpack.c.bf16 %v1017_v44, %v1013_v3  ;;  %v2629_v21 = vsub.f32 %v94_v46, %v1013_v3  ;;  %v2631_v4 = vsub.f32 %v98_v16, %v1017_v44  ;;  %v109_v0 = vld [vmem:[#allocation2 + $0x1c8] sm:$0xff]  ;;  %2177 = vmatprep.subr.bf16.mxu1 %v2617_v34 }
  0x36   :  { %3832 = vst [vmem:[#allocation68_spill] sm:$0xff] %v2621_v13  ;;  %3833 = vst [vmem:[#allocation69_spill] sm:$0xff] %v2623_v20  ;;  %1987 = vmatpush1.bf16.msra.mxu0 %v2621_v13  ;;  %v2635_v55 = vpack.c.bf16 %v168_v9, %v164_v27  ;;  %v2637_v57 = vsub.f32 %v101_v29, %v164_v27  ;;  %v2639_v10 = vsub.f32 %v105_v1, %v168_v9  ;;  %v114_v20 = vld [vmem:[#allocation2 + $0x1f0] sm:$0xff] }
  0x37   :  { %3834 = vst [vmem:[#allocation70_spill] sm:$0xff] %v2625_v39  ;;  %3835 = vst [vmem:[#allocation71_spill] sm:$0xff] %v2627_v48  ;;  %2179 = vmatpush1.bf16.msra.mxu1 %v2627_v48  ;;  %v1023_v46 = vand.u32 4294901760, %v107_v25  ;;  %v166_v43 = vand.u32 4294901760, %v100_v33  ;;  %v170_v16 = vand.u32 4294901760, %v104_v38  ;;  %v1021_v52 = vand.u32 4294901760, %v102_v30 }
  0x38   :  { %3836 = vst [vmem:[#allocation72_spill] sm:$0xff] %v2629_v21  ;;  %3837 = vst [vmem:[#allocation73_spill] sm:$0xff] %v2631_v4  ;;  %1989 = vmatprep.subr.bf16.mxu0 %v2635_v55  ;;  %v2643_v3 = vsub.f32 %v103_v23, %v1019_v31  ;;  %v1025_v44 = vand.u32 4294901760, %v106_v11  ;;  %v172_v34 = vand.u32 4294901760, %v109_v0  ;;  %v176_v13 = vand.u32 4294901760, %v113_v56  ;;  %v111_v4 = vld [vmem:[#allocation2 + $0x1d8] sm:$0xff] }
  0x39   :  { %3838 = vst [vmem:[#allocation74_spill] sm:$0xff] %v2635_v55  ;;  %3839 = vst [vmem:[#allocation75_spill] sm:$0xff] %v2637_v57  ;;  %v115_v21 = vld [vmem:[#allocation2 + $0x1f8] sm:$0xff]  ;;  %v2645_v27 = vpack.c.bf16 %v1023_v46, %v1019_v31  ;;  %v2647_v1 = vsub.f32 %v107_v25, %v1023_v46  ;;  %v2649_v9 = vpack.c.bf16 %v170_v16, %v166_v43  ;;  %v108_v48 = vld [vmem:[#allocation2 + $0x1c0] sm:$0xff]  ;;  %v1027_v46 = vand.u32 4294901760, %v111_v4 }
  0x3a   :  { %3840 = vst [vmem:[#allocation76_spill] sm:$0xff] %v2639_v10  ;;  %3841 = vst [vmem:[#allocation77_spill] sm:$0xff] %v2643_v3  ;;  %v2651_v29 = vsub.f32 %v100_v33, %v166_v43  ;;  %v112_v10 = vld [vmem:[#allocation2 + $0x1e0] sm:$0xff]  ;;  %v110_v57 = vld [vmem:[#allocation2 + $0x1d0] sm:$0xff]  ;;  %v2653_v39 = vsub.f32 %v104_v38, %v170_v16  ;;  %v2655_v23 = vpack.c.bf16 %v1025_v44, %v1021_v52  ;;  %v1031_v38 = vand.u32 4294901760, %v115_v21 }
  0x3b   :  { %3842 = vst [vmem:[#allocation78_spill] sm:$0xff] %v2645_v27  ;;  %3843 = vst [vmem:[#allocation79_spill] sm:$0xff] %v2649_v9  ;;  %v2657_v55 = vsub.f32 %v102_v30, %v1021_v52  ;;  %v2659_v3 = vsub.f32 %v106_v11, %v1025_v44  ;;  %2181 = vmatprep.subr.bf16.mxu1 %v2645_v27  ;;  %1991 = vmatpush1.bf16.msra.mxu0 %v2649_v9  ;;  %v174_v43 = vand.u32 4294901760, %v108_v48  ;;  %v31_v9 = vld [vmem:[%s3536_s0 + $0x18] sm:$0xff] }
  0x3c   :  { %3844 = vst [vmem:[#allocation80_spill] sm:$0xff] %v2651_v29  ;;  %3845 = vst [vmem:[#allocation81_spill] sm:$0xff] %v2653_v39  ;;  %v2663_v25 = vpack.c.bf16 %v176_v13, %v172_v34  ;;  %v2665_v33 = vsub.f32 %v109_v0, %v172_v34  ;;  %v2667_v31 = vsub.f32 %v113_v56, %v176_v13  ;;  %2183 = vmatpush1.bf16.msra.mxu1 %v2655_v23 }
  0x3d   :  { %3846 = vst [vmem:[#allocation82_spill] sm:$0xff] %v2655_v23  ;;  %v178_v30 = vand.u32 4294901760, %v112_v10  ;;  %v1029_v16 = vand.u32 4294901760, %v110_v57  ;;  %v2671_v11 = vsub.f32 %v111_v4, %v1027_v46  ;;  %v1033_v52 = vand.u32 4294901760, %v114_v20  ;;  %v28_v23 = vld [vmem:[%s3536_s0] sm:$0xff]  ;;  %v30_v4 = vld [vmem:[%s3536_s0 + $0x10] sm:$0xff] }
  0x3e   :  { %3847 = vst [vmem:[#allocation83_spill] sm:$0xff] %v2663_v25  ;;  %3848 = vst [vmem:[#allocation84_spill] sm:$0xff] %v2665_v33  ;;  %1993 = vmatprep.subr.bf16.mxu0 %v2663_v25  ;;  %v3618_v44 = vand.u32 4294901760, %v2470_v17  ;;  %v2675_v34 = vpack.c.bf16 %v1031_v38, %v1027_v46  ;;  %v2677_v56 = vsub.f32 %v115_v21, %v1031_v38  ;;  %v3856_v25 = vand.u32 4294901760, %v2472_v18 }
  0x3f   :  { %3849 = vst [vmem:[#allocation85_spill] sm:$0xff] %v2667_v31  ;;  %v2679_v13 = vpack.c.bf16 %v178_v30, %v174_v43  ;;  %v2681_v0 = vsub.f32 %v108_v48, %v174_v43  ;;  %v2692_v46 = vsub.f32 %v112_v10, %v178_v30  ;;  %v2694_v21 = vpack.c.bf16 %v1033_v52, %v1029_v16 }
  0x40   :  { %3850 = vst [vmem:[#allocation86_spill] sm:$0xff] %v2675_v34  ;;  %v2696_v38 = vsub.f32 %v110_v57, %v1029_v16  ;;  %v2698_v48 = vsub.f32 %v114_v20, %v1033_v52  ;;  %2185 = vmatprep.subr.bf16.mxu1 %v2675_v34  ;;  %v227_v43 = vsub.f32 %v2470_v17, %v3618_v44  ;;  %v3623_v10 = vand.u32 4294901760, %v2474_v19  ;;  %v3914_v17 = vld [vmem:[#allocation53_spill] sm:$0xff] }
  0x41   :  { %3851 = vst [vmem:[#allocation87_spill] sm:$0xff] %v2679_v13  ;;  %3852 = vst [vmem:[#allocation88_spill] sm:$0xff] %v2681_v0  ;;  %1995 = vmatpush1.bf16.msra.mxu0 %v2679_v13  ;;  %v239_v27 = vsub.f32 %v2472_v18, %v3856_v25  ;;  %v3630_v30 = vand.u32 4294901760, %v2478_v24  ;;  %2187 = vmatpush1.bf16.msra.mxu1 %v2694_v21  ;;  %2377 = vtanh.f32 %v31_v9  ;;  %v3628_v57 = vand.u32 4294901760, %v2482_v26 }
  0x42   :  { %3853 = vst [vmem:[#allocation89_spill] sm:$0xff] %v2692_v46  ;;  %3854 = vst [vmem:[#allocation90_spill] sm:$0xff] %v2694_v21  ;;  %v33_v20 = vadd.f32 %v30_v4, %v28_v23  ;;  %v3629_v16 = vand.u32 4294901760, %v2485_v28  ;;  %v228_v52 = vand.u32 4294901760, %v227_v43  ;;  %v1082_v44 = vsub.f32 %v2474_v19, %v3623_v10 }
  0x43   :  { %3855 = vst [vmem:[#allocation91_spill] sm:$0xff] %v2696_v38  ;;  %v240_v13 = vand.u32 4294901760, %v239_v27  ;;  %v1094_v25 = vsub.f32 %v2478_v24, %v3630_v30  ;;  %v233_v9 = vsub.f32 %v2482_v26, %v3628_v57  ;;  %v3632_v4 = vand.u32 4294901760, %v2491_v40  ;;  %v3910_v26 = vld [vmem:[#allocation47_spill] sm:$0xff]  ;;  %v3913_v24 = vld [vmem:[#allocation52_spill] sm:$0xff] }
  0x44   :  { %v1963_v34 = vmul.f32 -1.442695, %v33_v20  ;;  %v245_v23 = vsub.f32 %v2485_v28, %v3629_v16  ;;  %v1083_v43 = vand.u32 4294901760, %v1082_v44  ;;  %v3631_v10 = vand.u32 4294901760, %v2493_v41  ;;  %v3911_v28 = vld [vmem:[#allocation49_spill] sm:$0xff] }
  0x45   :  { %v1996_v27 = vpack.c.bf16 %v240_v13, %v228_v52  ;;  %v1095_v21 = vand.u32 4294901760, %v1094_v25  ;;  %v234_v19 = vand.u32 4294901760, %v233_v9  ;;  %v1088_v20 = vsub.f32 %v2491_v40, %v3632_v4  ;;  %v3908_v40 = vld [vmem:[#allocation44_spill] sm:$0xff] }
  0x46   :  { %2379 = vpow2.f32 %v1963_v34  ;;  %v246_v18 = vand.u32 4294901760, %v245_v23  ;;  %v1100_v16 = vsub.f32 %v2493_v41, %v3631_v10  ;;  %v3634_v30 = vand.u32 4294901760, %v2495_v42  ;;  %v3909_v41 = vld [vmem:[#allocation45_spill] sm:$0xff] }
  0x47   :  { %1997 = vmatprep.subr.bf16.mxu0 %v1996_v27  ;;  %v2188_v57 = vpack.c.bf16 %v1095_v21, %v1083_v43  ;;  %v3633_v44 = vand.u32 4294901760, %v2499_v47  ;;  %v1089_v52 = vand.u32 4294901760, %v1088_v20  ;;  %v3635_v34 = vand.u32 4294901760, %v2503_v49 }
  0x48   :  { %v2735_v13 = vpack.c.bf16 %v246_v18, %v234_v19  ;;  %v3636_v25 = vand.u32 4294901760, %v2506_v51  ;;  %v1101_v9 = vand.u32 4294901760, %v1100_v16  ;;  %v251_v21 = vsub.f32 %v2495_v42, %v3634_v30 }
  0x49   :  { %2189 = vmatprep.subr.bf16.mxu1 %v2188_v57  ;;  %v263_v23 = vsub.f32 %v2499_v47, %v3633_v44  ;;  %v3639_v27 = vand.u32 4294901760, %v2508_v53  ;;  %v1106_v18 = vsub.f32 %v2503_v49, %v3635_v34  ;;  %v3642_v57 = vand.u32 4294901760, %v2514_v62 }
  0x4a   :  { %v1118_v19 = vsub.f32 %v2506_v51, %v3636_v25  ;;  %v3645_v16 = vand.u32 4294901760, %v2516_v63  ;;  %v2754_v43 = vpack.c.bf16 %v1101_v9, %v1089_v52  ;;  %v252_v20 = vand.u32 4294901760, %v251_v21 }
  0x4b   :  { %v264_v10 = vand.u32 4294901760, %v263_v23  ;;  %v257_v4 = vsub.f32 %v2508_v53, %v3639_v27  ;;  %v2759_v44 = vpop.eup %2377  ;;  %v1107_v30 = vand.u32 4294901760, %v1106_v18  ;;  %v269_v25 = vsub.f32 %v2514_v62, %v3642_v57 }
  0x4c   :  { %v1119_v34 = vand.u32 4294901760, %v1118_v19  ;;  %v1112_v51 = vsub.f32 %v2516_v63, %v3645_v16  ;;  %v2769_v9 = vadd.f32 1.0, %v2759_v44  ;;  %v3651_v53 = vand.u32 4294901760, %v2520_v6 }
  0x4d   :  { %v2771_v21 = vpack.c.bf16 %v264_v10, %v252_v20  ;;  %v258_v23 = vand.u32 4294901760, %v257_v4  ;;  %v270_v18 = vand.u32 4294901760, %v269_v25  ;;  %v3650_v57 = vand.u32 4294901760, %v2524_v8 }
  0x4e   :  { %v2773_v27 = vpack.c.bf16 %v1119_v34, %v1107_v30  ;;  %v1113_v19 = vand.u32 4294901760, %v1112_v51  ;;  %v3652_v62 = vand.u32 4294901760, %v2527_v12  ;;  %v3657_v16 = vand.u32 4294901760, %v2531_v14 }
  0x4f   :  { %v3662_v52 = vand.u32 4294901760, %v2533_v15  ;;  %v2780_v49 = vpack.c.bf16 %v270_v18, %v258_v23  ;;  %v1124_v10 = vsub.f32 %v2520_v6, %v3651_v53  ;;  %v3665_v30 = vand.u32 4294901760, %v2540_v35 }
  0x50   :  { %v2380_v63 = vpop.eup %2379  ;;  %v3668_v51 = vand.u32 4294901760, %v2542_v36  ;;  %v275_v34 = vsub.f32 %v2524_v8, %v3650_v57  ;;  %v287_v25 = vsub.f32 %v2527_v12, %v3652_v62  ;;  %v1130_v20 = vsub.f32 %v2531_v14, %v3657_v16 }
  0x51   :  { %v37_v4 = vadd.f32 1.0, %v2380_v63  ;;  %v1125_v23 = vand.u32 4294901760, %v1124_v10  ;;  %v1142_v18 = vsub.f32 %v2533_v15, %v3662_v52  ;;  %v281_v63 = vsub.f32 %v2540_v35, %v3665_v30 }
  0x52   :  { %v293_v57 = vsub.f32 %v2542_v36, %v3668_v51  ;;  %v276_v53 = vand.u32 4294901760, %v275_v34  ;;  %v288_v62 = vand.u32 4294901760, %v287_v25  ;;  %v1131_v12 = vand.u32 4294901760, %v1130_v20 }
  0x53   :  { %2381 = vrcp.f32 %v37_v4  ;;  %v2805_v8 = vpack.c.bf16 %v1125_v23, %v1113_v19  ;;  %v1143_v16 = vand.u32 4294901760, %v1142_v18  ;;  %v282_v10 = vand.u32 4294901760, %v281_v63 }
  0x54   :  { %v294_v14 = vand.u32 4294901760, %v293_v57  ;;  %v2807_v6 = vpack.c.bf16 %v288_v62, %v276_v53  ;;  %v3674_v52 = vand.u32 4294901760, %v2546_v45  ;;  %v3672_v15 = vand.u32 4294901760, %v2548_v50 }
  0x55   :  { %v3669_v30 = vand.u32 4294901760, %v2552_v54  ;;  %v2812_v35 = vpack.c.bf16 %v1143_v16, %v1131_v12  ;;  %v3670_v4 = vand.u32 4294901760, %v2556_v58  ;;  %v3671_v19 = vand.u32 4294901760, %v2560_v60 }
  0x56   :  { %v2814_v51 = vpack.c.bf16 %v294_v14, %v282_v10  ;;  %v1136_v57 = vsub.f32 %v2546_v45, %v3674_v52  ;;  %v1148_v53 = vsub.f32 %v2548_v50, %v3672_v15  ;;  %v3673_v12 = vand.u32 4294901760, %v2563_v2 }
  0x57   :  { %v299_v62 = vsub.f32 %v2552_v54, %v3669_v30  ;;  %v311_v14 = vsub.f32 %v2556_v58, %v3670_v4  ;;  %v1154_v16 = vsub.f32 %v2560_v60, %v3671_v19  ;;  %v3675_v34 = vand.u32 4294901760, %v2566_v22 }
  0x58   :  { %v3680_v25 = vand.u32 4294901760, %v2570_v37  ;;  %v1137_v20 = vand.u32 4294901760, %v1136_v57  ;;  %v1149_v23 = vand.u32 4294901760, %v1148_v53  ;;  %v1166_v63 = vsub.f32 %v2563_v2, %v3673_v12  ;;  %v29_v57 = vld [vmem:[%s3536_s0 + $0x8] sm:$0xff] }
  0x59   :  { %v300_v18 = vand.u32 4294901760, %v299_v62  ;;  %v312_v10 = vand.u32 4294901760, %v311_v14  ;;  %v1155_v30 = vand.u32 4294901760, %v1154_v16  ;;  %v305_v4 = vsub.f32 %v2566_v22, %v3675_v34 }
  0x5a   :  { %v317_v19 = vsub.f32 %v2570_v37, %v3680_v25  ;;  %v2848_v53 = vpack.c.bf16 %v1149_v23, %v1137_v20  ;;  %v1167_v62 = vand.u32 4294901760, %v1166_v63  ;;  %v3681_v15 = vand.u32 4294901760, %v2574_v32 }
  0x5b   :  { %v3686_v14 = vand.u32 4294901760, %v2576_v59  ;;  %v2852_v16 = vpack.c.bf16 %v312_v10, %v300_v18  ;;  %v306_v12 = vand.u32 4294901760, %v305_v4  ;;  %v3692_v34 = vand.u32 4294901760, %v2580_v7 }
  0x5c   :  { %v318_v52 = vand.u32 4294901760, %v317_v19  ;;  %v2855_v2 = vpack.c.bf16 %v1167_v62, %v1155_v30  ;;  %v1160_v25 = vsub.f32 %v2574_v32, %v3681_v15  ;;  %v3691_v23 = vand.u32 4294901760, %v2582_v5  ;;  %v3858_v19 = vld [vmem:[#allocation54_spill] sm:$0xff]  ;;  %v3859_v32 = vld [vmem:[#allocation56_spill] sm:$0xff] }
  0x5d   :  { %v2382_v22 = vpop.eup %2381  ;;  %v1172_v20 = vsub.f32 %v2576_v59, %v3686_v14  ;;  %v323_v4 = vsub.f32 %v2580_v7, %v3692_v34  ;;  %v3700_v30 = vand.u32 4294901760, %v3858_v19  ;;  %v3699_v37 = vand.u32 4294901760, %v3859_v32 }
  0x5e   :  { %v40_v63 = vmul.f32 %v2382_v22, %v29_v57  ;;  %v2864_v18 = vpack.c.bf16 %v318_v52, %v306_v12  ;;  %v1161_v10 = vand.u32 4294901760, %v1160_v25  ;;  %v335_v15 = vsub.f32 %v2582_v5, %v3691_v23  ;;  %v3861_v57 = vld [vmem:[#allocation58_spill] sm:$0xff] }
  0x5f   :  { %v1173_v62 = vand.u32 4294901760, %v1172_v20  ;;  %v324_v60 = vand.u32 4294901760, %v323_v4  ;;  %v1178_v22 = vsub.f32 %v3858_v19, %v3700_v30  ;;  %v1190_v25 = vsub.f32 %v3859_v32, %v3699_v37 }
  0x60   :  { %3857 = vst [vmem:[#allocation92_spill] sm:$0xff] %v2864_v18  ;;  %v41_v14 = vmax.f32 %v40_v63, 0.0  ;;  %v44_v59 = vsub.f32 0.0, %v40_v63  ;;  %v336_v12 = vand.u32 4294901760, %v335_v15  ;;  %v3701_v20 = vand.u32 4294901760, %v3861_v57  ;;  %v3863_v63 = vld [vmem:[#allocation59_spill] sm:$0xff] }
  0x61   :  { %v2877_v52 = vpack.c.bf16 %v1173_v62, %v1161_v10  ;;  %v3862_v23 = vsub.f32 1.0, %v2759_v44  ;;  %v1179_v5 = vand.u32 4294901760, %v1178_v22  ;;  %v3703_v4 = vand.u32 4294901760, %v3863_v63  ;;  %v3865_v10 = vld [vmem:[#allocation61_spill] sm:$0xff] }
  0x62   :  { %v45_v18 = vmax.f32 %v44_v59, 0.0  ;;  %v2886_v7 = vpack.c.bf16 %v336_v12, %v324_v60  ;;  %v1191_v58 = vand.u32 4294901760, %v1190_v25  ;;  %v329_v15 = vsub.f32 %v3861_v57, %v3701_v20  ;;  %v3869_v25 = vld [vmem:[#allocation65_spill] sm:$0xff] }
  0x63   :  { %3860 = vst [vmem:[#allocation54_spill] sm:$0xff] %v2877_v52  ;;  %v43_v34 = vmul.f32 %v3862_v23, %v41_v14  ;;  %v3704_v62 = vand.u32 4294901760, %v3865_v10  ;;  %v341_v30 = vsub.f32 %v3863_v63, %v3703_v4  ;;  %v3866_v14 = vld [vmem:[#allocation62_spill] sm:$0xff]  ;;  %v3867_v23 = vld [vmem:[#allocation64_spill] sm:$0xff]  ;;  %v3707_v20 = vand.u32 4294901760, %v3869_v25 }
  0x64   :  { %3864 = vst [vmem:[#allocation56_spill] sm:$0xff] %v2886_v7  ;;  %v47_v37 = vmul.f32 %v2769_v9, %v45_v18  ;;  %v3705_v59 = vand.u32 4294901760, %v3866_v14  ;;  %v3706_v22 = vand.u32 4294901760, %v3867_v23  ;;  %v2898_v52 = vpack.c.bf16 %v1191_v58, %v1179_v5  ;;  %v3870_v58 = vld [vmem:[#allocation66_spill] sm:$0xff]  ;;  %v3927_v63 = vld [vmem:[#allocation76_spill] sm:$0xff] }
  0x65   :  { %v330_v60 = vand.u32 4294901760, %v329_v15  ;;  %v1184_v12 = vsub.f32 %v3865_v10, %v3704_v62  ;;  %v342_v57 = vand.u32 4294901760, %v341_v30  ;;  %v359_v5 = vsub.f32 %v3869_v25, %v3707_v20  ;;  %v3872_v20 = vld [vmem:[#allocation69_spill] sm:$0xff]  ;;  %v3874_v10 = vld [vmem:[#allocation70_spill] sm:$0xff] }
  0x66   :  { %3868 = vst [vmem:[#allocation93_spill] sm:$0xff] %v2898_v52  ;;  %v48_v7 = vsub.f32 %v43_v34, %v47_v37  ;;  %v1196_v9 = vsub.f32 %v3866_v14, %v3705_v59  ;;  %v347_v18 = vsub.f32 %v3867_v23, %v3706_v22  ;;  %v3714_v15 = vand.u32 4294901760, %v3870_v58 }
  0x67   :  { %v1185_v4 = vand.u32 4294901760, %v1184_v12  ;;  %v3712_v62 = vand.u32 4294901760, %v2619_v61  ;;  %v2916_v34 = vpack.c.bf16 %v342_v57, %v330_v60  ;;  %v360_v59 = vand.u32 4294901760, %v359_v5 }
  0x68   :  { %v49_v37 = vadd.f32 %v2759_v44, %v48_v7  ;;  %v1197_v30 = vand.u32 4294901760, %v1196_v9  ;;  %v348_v52 = vand.u32 4294901760, %v347_v18  ;;  %v1202_v22 = vsub.f32 %v3870_v58, %v3714_v15  ;;  %v3875_v44 = vld [vmem:[#allocation72_spill] sm:$0xff] }
  0x69   :  { %3871 = vst [vmem:[#allocation66_spill] sm:$0xff] %v2916_v34  ;;  %v1214_v12 = vsub.f32 %v2619_v61, %v3712_v62  ;;  %v3713_v25 = vand.u32 4294901760, %v3872_v20  ;;  %v3716_v7 = vand.u32 4294901760, %v3874_v10  ;;  %v3717_v57 = vand.u32 4294901760, %v3875_v44  ;;  %v3881_v15 = vld [vmem:[#allocation76_spill] sm:$0xff] }
  0x6a   :  { %v50_v23 = vmul.f32 2.0, %v49_v37  ;;  %v2925_v14 = vpack.c.bf16 %v1197_v30, %v1185_v4  ;;  %v2929_v60 = vpack.c.bf16 %v360_v59, %v348_v52  ;;  %v1203_v9 = vand.u32 4294901760, %v1202_v22  ;;  %v3878_v59 = vld [vmem:[#allocation73_spill] sm:$0xff] }
  0x6b   :  { %v1215_v18 = vand.u32 4294901760, %v1214_v12  ;;  %v353_v5 = vsub.f32 %v3872_v20, %v3713_v25  ;;  %v365_v4 = vsub.f32 %v3874_v10, %v3716_v7  ;;  %v1208_v52 = vsub.f32 %v3875_v44, %v3717_v57  ;;  %v3880_v12 = vld [vmem:[#allocation75_spill] sm:$0xff] }
  0x6c   :  { %3873 = vst [vmem:[#allocation94_spill] sm:$0xff] %v2925_v14  ;;  %3876 = vst [vmem:[#allocation70_spill] sm:$0xff] %v2929_v60  ;;  %v2937_v62 = vand.u32 4294901760, %v50_v23  ;;  %v3718_v22 = vand.u32 4294901760, %v3878_v59  ;;  %v3722_v25 = vand.u32 4294901760, %v3880_v12  ;;  %v3723_v60 = vand.u32 4294901760, %v3881_v15 }
  0x6d   :  { %51 = vst [vmem:[%s3538_s2] sm:$0xff] %v50_v23  ;;  %v2946_v37 = vpack.c.bf16 %v1215_v18, %v1203_v9  ;;  %v354_v30 = vand.u32 4294901760, %v353_v5  ;;  %v366_v34 = vand.u32 4294901760, %v365_v4  ;;  %v1209_v20 = vand.u32 4294901760, %v1208_v52  ;;  %v3883_v18 = vld [vmem:[#allocation77_spill] sm:$0xff] }
  0x6e   :  { %3877 = vst [vmem:[#allocation95_spill] sm:$0xff] %v2937_v62  ;;  %v2951_v14 = vsub.f32 %v50_v23, %v2937_v62  ;;  %v1220_v7 = vsub.f32 %v3878_v59, %v3718_v22  ;;  %v371_v57 = vsub.f32 %v3880_v12, %v3722_v25  ;;  %v383_v9 = vsub.f32 %v3881_v15, %v3723_v60 }
  0x6f   :  { %3879 = vst [vmem:[#allocation96_spill] sm:$0xff] %v2946_v37  ;;  %v3726_v5 = vand.u32 4294901760, %v3883_v18  ;;  %v3728_v37 = vand.u32 4294901760, %v2647_v1  ;;  %v2967_v4 = vpack.c.bf16 %v366_v34, %v354_v30  ;;  %v3729_v22 = vand.u32 4294901760, %v2651_v29 }
  0x70   :  { %3882 = vst [vmem:[#allocation97_spill] sm:$0xff] %v2951_v14  ;;  %v2965_v23 = vand.u32 4294901760, %v2951_v14  ;;  %v1221_v52 = vand.u32 4294901760, %v1220_v7  ;;  %v372_v62 = vand.u32 4294901760, %v371_v57  ;;  %v384_v59 = vand.u32 4294901760, %v383_v9 }
  0x71   :  { %3885 = vst [vmem:[#allocation99_spill] sm:$0xff] %v2967_v4  ;;  %v1226_v25 = vsub.f32 %v3883_v18, %v3726_v5  ;;  %v1238_v60 = vsub.f32 %v2647_v1, %v3728_v37  ;;  %v377_v34 = vsub.f32 %v2651_v29, %v3729_v22  ;;  %v3740_v7 = vand.u32 4294901760, %v2653_v39 }
  0x72   :  { %3884 = vst [vmem:[#allocation98_spill] sm:$0xff] %v2965_v23  ;;  %v216_v15 = vsub.f32 %v2951_v14, %v2965_v23  ;;  %v2978_v12 = vpack.c.bf16 %v1221_v52, %v1209_v20  ;;  %v2984_v57 = vpack.c.bf16 %v384_v59, %v372_v62  ;;  %v3732_v5 = vand.u32 4294901760, %v2657_v55  ;;  %v3902_v14 = vld [vmem:[#allocation35_spill] sm:$0xff]  ;;  %v3906_v23 = vld [vmem:[#allocation41_spill] sm:$0xff] }
  0x73   :  { %v1227_v30 = vand.u32 4294901760, %v1226_v25  ;;  %v1239_v9 = vand.u32 4294901760, %v1238_v60  ;;  %v378_v18 = vand.u32 4294901760, %v377_v34  ;;  %v389_v37 = vsub.f32 %v2653_v39, %v3740_v7  ;;  %v3899_v7 = vld [vmem:[#allocation30_spill] sm:$0xff] }
  0x74   :  { %v217_v4 = vand.u32 4294901760, %v216_v15  ;;  %v3730_v20 = vand.u32 4294901760, %v2659_v3  ;;  %v1232_v22 = vsub.f32 %v2657_v55, %v3732_v5  ;;  %v3731_v62 = vand.u32 4294901760, %v2665_v33 }
  0x75   :  { %v2991_v52 = vpack.c.bf16 %v1239_v9, %v1227_v30  ;;  %v3733_v25 = vand.u32 4294901760, %v2667_v31  ;;  %v390_v15 = vand.u32 4294901760, %v389_v37  ;;  %v3734_v59 = vand.u32 4294901760, %v2671_v11 }
  0x76   :  { %218 = vmatmul.mubr.f32.vlgmr.msra.gmra.mrb[0].mxu0 %v217_v4  ;;  %1073 = vmatmul.mubr.f32.vlgmr.msra.gmra.mrb[0].mxu1 %v217_v4  ;;  %v1244_v60 = vsub.f32 %v2659_v3, %v3730_v20  ;;  %v3736_v34 = vand.u32 4294901760, %v2677_v56  ;;  %v1233_v30 = vand.u32 4294901760, %v1232_v22  ;;  %v395_v9 = vsub.f32 %v2665_v33, %v3731_v62  ;;  %v3932_v39 = vld [vmem:[#allocation96_spill] sm:$0xff] }
  0x77   :  { %1999 = vmatpush1.bf16.msra.mxu0 %v2735_v13  ;;  %2191 = vmatpush1.bf16.msra.mxu1 %v2754_v43  ;;  %v407_v37 = vsub.f32 %v2667_v31, %v3733_v25  ;;  %v3735_v4 = vand.u32 4294901760, %v2681_v0  ;;  %v3014_v20 = vpack.c.bf16 %v390_v15, %v378_v18  ;;  %v1250_v43 = vsub.f32 %v2671_v11, %v3734_v59 }
  0x78   :  { %2001 = vmatprep.subr.bf16.mxu0 %v2771_v21  ;;  %2193 = vmatprep.subr.bf16.mxu1 %v2773_v27  ;;  %v1245_v13 = vand.u32 4294901760, %v1244_v60  ;;  %v1262_v22 = vsub.f32 %v2677_v56, %v3736_v34  ;;  %v396_v62 = vand.u32 4294901760, %v395_v9  ;;  %v3739_v21 = vand.u32 4294901760, %v2692_v46 }
  0x79   :  { %3886 = vst [vmem:[#allocation100_spill] sm:$0xff] %v3014_v20  ;;  %v408_v5 = vand.u32 4294901760, %v407_v37  ;;  %v401_v25 = vsub.f32 %v2681_v0, %v3735_v4  ;;  %v3887_v27 = vmov 0.0   ;;  %v1251_v15 = vand.u32 4294901760, %v1250_v43 }
  0x7a   :  { %448 = vmatprep.mubr.f32.mxu0 %v3887_v27  ;;  %1303 = vmatprep.mubr.f32.mxu1 %v3887_v27  ;;  %v3028_v18 = vpack.c.bf16 %v1245_v13, %v1233_v30  ;;  %v1263_v60 = vand.u32 4294901760, %v1262_v22  ;;  %v3738_v59 = vand.u32 4294901760, %v2696_v38  ;;  %v413_v4 = vsub.f32 %v2692_v46, %v3739_v21  ;;  %v3897_v21 = vld [vmem:[#allocation27_spill] sm:$0xff]  ;;  %v3901_v22 = vld [vmem:[#allocation33_spill] sm:$0xff]  ;;  %v3912_v13 = vld [vmem:[#allocation50_spill] sm:$0xff] }
  0x7b   :  { %2003 = vmatpush1.bf16.msra.mxu0 %v2780_v49  ;;  %2195 = vmatpush1.bf16.msra.mxu1 %v2805_v8  ;;  %v3033_v9 = vpack.c.bf16 %v408_v5, %v396_v62  ;;  %v402_v37 = vand.u32 4294901760, %v401_v25  ;;  %v3737_v34 = vand.u32 4294901760, %v2698_v48  ;;  %v3894_v5 = vld [vmem:[#allocation24_spill] sm:$0xff]  ;;  %v3926_v8 = vld [vmem:[#allocation75_spill] sm:$0xff] }
  0x7c   :  { %3888 = vst [vmem:[#allocation101_spill] sm:$0xff] %v3028_v18  ;;  %2005 = vmatprep.subr.bf16.mxu0 %v2807_v6  ;;  %2197 = vmatprep.subr.bf16.mxu1 %v2812_v35  ;;  %v3041_v30 = vpack.c.bf16 %v1263_v60, %v1251_v15  ;;  %v1256_v49 = vsub.f32 %v2696_v38, %v3738_v59  ;;  %v414_v62 = vand.u32 4294901760, %v413_v4  ;;  %v3893_v60 = vld [vmem:[#allocation23_spill] sm:$0xff]  ;;  %v3896_v59 = vld [vmem:[#allocation25_spill] sm:$0xff]  ;;  %v3900_v15 = vld [vmem:[#allocation32_spill] sm:$0xff]  ;;  %v3937_v20 = vand.u32 4294901760, %v3894_v5 }
  0x7d   :  { %3889 = vst [vmem:[#allocation102_spill] sm:$0xff] %v3033_v9  ;;  %v1268_v25 = vsub.f32 %v2698_v48, %v3737_v34  ;;  %v3920_v4 = vld [vmem:[#allocation64_spill] sm:$0xff]  ;;  %v3923_v18 = vld [vmem:[#allocation93_spill] sm:$0xff]  ;;  %v3929_v9 = vld [vmem:[#allocation66_spill] sm:$0xff] }
  0x7e   :  { %3890 = vst [vmem:[#allocation103_spill] sm:$0xff] %v3041_v30  ;;  %v1257_v35 = vand.u32 4294901760, %v1256_v49  ;;  %v3063_v34 = vpack.c.bf16 %v414_v62, %v402_v37  ;;  %v3898_v49 = vld [vmem:[#allocation28_spill] sm:$0xff]  ;;  %v3921_v30 = vld [vmem:[#allocation65_spill] sm:$0xff] }
  0x7f   :  { %2007 = vmatpush1.bf16.msra.mxu0 %v2814_v51  ;;  %2199 = vmatpush1.bf16.msra.mxu1 %v2848_v53  ;;  %v1269_v43 = vand.u32 4294901760, %v1268_v25  ;;  %v3903_v51 = vld [vmem:[#allocation36_spill] sm:$0xff]  ;;  %v3904_v53 = vld [vmem:[#allocation38_spill] sm:$0xff]  ;;  %v3924_v37 = vld [vmem:[#allocation69_spill] sm:$0xff] }
  0x80   :  { %3895 = vst [vmem:[#allocation23_spill] sm:$0xff] %v3063_v34  ;;  %2009 = vmatprep.subr.bf16.mxu0 %v2852_v16  ;;  %2201 = vmatprep.subr.bf16.mxu1 %v2855_v2  ;;  %v3907_v16 = vld [vmem:[#allocation43_spill] sm:$0xff]  ;;  %v3916_v25 = vld [vmem:[#allocation54_spill] sm:$0xff]  ;;  %v3918_v2 = vld [vmem:[#allocation61_spill] sm:$0xff] }
  0x81   :  { %v3077_v62 = vpack.c.bf16 %v1269_v43, %v1257_v35  ;;  %v3915_v35 = vld [vmem:[#allocation92_spill] sm:$0xff]  ;;  %v3928_v34 = vld [vmem:[#allocation77_spill] sm:$0xff]  ;;  %v3934_v43 = vand.u32 4294901760, %v2499_v47 }
  0x82   :  { %v3922_v27 = vld [vmem:[#allocation56_spill] sm:$0xff] }
  0x83   :  { %3905 = vst [vmem:[#allocation24_spill] sm:$0xff] %v3077_v62  ;;  %2011 = vmatpush1.bf16.msra.mxu0 %v3915_v35  ;;  %2203 = vmatpush1.bf16.msra.mxu1 %v3916_v25  ;;  %v3925_v25 = vld [vmem:[#allocation73_spill] sm:$0xff]  ;;  %v3930_v62 = vld [vmem:[#allocation94_spill] sm:$0xff]  ;;  %v3936_v35 = vand.u32 4294901760, %v3893_v60 }
  0x84   :  { %2013 = vmatprep.subr.bf16.mxu0 %v3922_v27  ;;  %2205 = vmatprep.subr.bf16.mxu1 %v3923_v18  ;;  %v3931_v27 = vld [vmem:[#allocation70_spill] sm:$0xff]  ;;  %v3933_v18 = vand.u32 4294901760, %v2495_v42 }
  0x85   :  { %v3139_v46 = vpack.c.bf16 %v3937_v20, %v3936_v35  ;;  %v3948_v20 = vand.u32 4294901760, %v3902_v14  ;;  %v3949_v35 = vand.u32 4294901760, %v3903_v51 }
  0x86   :  { %v3133_v31 = vpack.c.bf16 %v3934_v43, %v3933_v18  ;;  %v3945_v43 = vand.u32 4294901760, %v3900_v15  ;;  %v3946_v18 = vand.u32 4294901760, %v3901_v22 }
  0x87   :  { %2015 = vmatpush1.bf16.msra.mxu0 %v3929_v9  ;;  %2207 = vmatpush1.bf16.msra.mxu1 %v3930_v62  ;;  %3938 = vst [vmem:[#allocation27_spill] sm:$0xff] %v3139_v46  ;;  %v3939_v9 = vand.u32 4294901760, %v3896_v59  ;;  %v3940_v62 = vand.u32 4294901760, %v3897_v21  ;;  %v3163_v46 = vpack.c.bf16 %v3949_v35, %v3948_v20  ;;  %v3960_v20 = vand.u32 4294901760, %v3907_v16 }
  0x88   :  { %2017 = vmatprep.subr.bf16.mxu0 %v3931_v27  ;;  %2209 = vmatprep.subr.bf16.mxu1 %v3932_v39  ;;  %3935 = vst [vmem:[#allocation25_spill] sm:$0xff] %v3133_v31  ;;  %v3942_v39 = vand.u32 4294901760, %v3898_v49  ;;  %v3943_v27 = vand.u32 4294901760, %v3899_v7  ;;  %v3157_v31 = vpack.c.bf16 %v3946_v18, %v3945_v43  ;;  %v3957_v43 = vand.u32 4294901760, %v2552_v54 }
  0x89   :  { %v3145_v6 = vpack.c.bf16 %v3940_v62, %v3939_v9  ;;  %3950 = vst [vmem:[#allocation33_spill] sm:$0xff] %v3163_v46  ;;  %v3951_v9 = vand.u32 4294901760, %v3904_v53  ;;  %v3952_v62 = vand.u32 4294901760, %v2542_v36  ;;  %v3958_v18 = vand.u32 4294901760, %v3906_v23 }
  0x8a   :  { %v3151_v42 = vpack.c.bf16 %v3943_v27, %v3942_v39  ;;  %3947 = vst [vmem:[#allocation32_spill] sm:$0xff] %v3157_v31  ;;  %v3954_v39 = vand.u32 4294901760, %v2546_v45  ;;  %v3955_v27 = vand.u32 4294901760, %v2548_v50  ;;  %v3961_v35 = vand.u32 4294901760, %v3908_v40 }
  0x8b   :  { %3941 = vst [vmem:[#allocation28_spill] sm:$0xff] %v3145_v6  ;;  %v3169_v6 = vpack.c.bf16 %v3952_v62, %v3951_v9  ;;  %v3181_v31 = vpack.c.bf16 %v3958_v18, %v3957_v43  ;;  %v3963_v9 = vld [vmem:[#allocation99_spill] sm:$0xff]  ;;  %2211 = vmatpush1.bf16.msra.mxu1 %v2978_v12  ;;  %v3964_v62 = vand.u32 4294901760, %v3909_v41  ;;  %v3968_v43 = vand.u32 4294901760, %v3912_v13 }
  0x8c   :  { %3944 = vst [vmem:[#allocation30_spill] sm:$0xff] %v3151_v42  ;;  %v3175_v42 = vpack.c.bf16 %v3955_v27, %v3954_v39  ;;  %v3187_v46 = vpack.c.bf16 %v3961_v35, %v3960_v20  ;;  %2019 = vmatpush1.bf16.msra.mxu0 %v3963_v9  ;;  %v3965_v39 = vand.u32 4294901760, %v3910_v26  ;;  %v3971_v20 = vand.u32 4294901760, %v3914_v17  ;;  %2213 = vmatprep.subr.bf16.mxu1 %v2991_v52 }
  0x8d   :  { %3953 = vst [vmem:[#allocation35_spill] sm:$0xff] %v3169_v6  ;;  %3959 = vst [vmem:[#allocation38_spill] sm:$0xff] %v3181_v31  ;;  %v3970_v31 = vand.u32 4294901760, %v3913_v24  ;;  %2021 = vmatprep.subr.bf16.mxu0 %v2984_v57  ;;  %v3973_v12 = vand.u32 4294901760, %v3858_v19  ;;  %v3974_v9 = vand.u32 4294901760, %v3859_v32  ;;  %v3985_v57 = vand.u32 4294901760, %v3920_v4 }
  0x8e   :  { %3956 = vst [vmem:[#allocation36_spill] sm:$0xff] %v3175_v42  ;;  %3962 = vst [vmem:[#allocation41_spill] sm:$0xff] %v3187_v46  ;;  %v3195_v27 = vpack.c.bf16 %v3965_v39, %v3964_v62  ;;  %v3967_v42 = vand.u32 4294901760, %v3911_v28  ;;  %v3976_v39 = vld [vmem:[#allocation58_spill] sm:$0xff]  ;;  %v3981_v46 = vand.u32 4294901760, %v3918_v2  ;;  %v3986_v52 = vand.u32 4294901760, %v3921_v30 }
  0x8f   :  { %v3207_v35 = vpack.c.bf16 %v3971_v20, %v3970_v31  ;;  %v3215_v62 = vpack.c.bf16 %v3974_v9, %v3973_v12  ;;  %v3982_v31 = vld [vmem:[#allocation62_spill] sm:$0xff]  ;;  %v3988_v12 = vand.u32 4294901760, %v3870_v58  ;;  %v3989_v9 = vand.u32 4294901760, %v2619_v61 }
  0x90   :  { %3966 = vst [vmem:[#allocation43_spill] sm:$0xff] %v3195_v27  ;;  %v3201_v18 = vpack.c.bf16 %v3968_v43, %v3967_v42  ;;  %v3977_v27 = vand.u32 4294901760, %v3976_v39  ;;  %v3978_v42 = vld [vmem:[#allocation59_spill] sm:$0xff]  ;;  %v3983_v20 = vand.u32 4294901760, %v3982_v31  ;;  %v3233_v6 = vpack.c.bf16 %v3986_v52, %v3985_v57 }
  0x91   :  { %3972 = vst [vmem:[#allocation45_spill] sm:$0xff] %v3207_v35  ;;  %3975 = vst [vmem:[#allocation47_spill] sm:$0xff] %v3215_v62  ;;  %v3979_v43 = vand.u32 4294901760, %v3978_v42  ;;  %v3239_v62 = vpack.c.bf16 %v3989_v9, %v3988_v12  ;;  %v3997_v57 = vand.u32 4294901760, %v3926_v8  ;;  %v3998_v52 = vand.u32 4294901760, %v3927_v63 }
  0x92   :  { %3969 = vst [vmem:[#allocation44_spill] sm:$0xff] %v3201_v18  ;;  %v3227_v35 = vpack.c.bf16 %v3983_v20, %v3981_v46  ;;  %3987 = vst [vmem:[#allocation52_spill] sm:$0xff] %v3233_v6  ;;  %v3994_v46 = vand.u32 4294901760, %v3875_v44  ;;  %v3995_v20 = vand.u32 4294901760, %v3925_v25  ;;  %v4000_v12 = vand.u32 4294901760, %v3928_v34 }
  0x93   :  { %v3221_v18 = vpack.c.bf16 %v3979_v43, %v3977_v27  ;;  %3990 = vst [vmem:[#allocation53_spill] sm:$0xff] %v3239_v62  ;;  %v3991_v27 = vand.u32 4294901760, %v3924_v37  ;;  %v3992_v43 = vand.u32 4294901760, %v3874_v10  ;;  %v3257_v6 = vpack.c.bf16 %v3998_v52, %v3997_v57  ;;  %v4010_v57 = vld [vmem:[#allocation100_spill] sm:$0xff]  ;;  %v4011_v52 = vld [vmem:[#allocation101_spill] sm:$0xff] }
  0x94   :  { %3984 = vst [vmem:[#allocation50_spill] sm:$0xff] %v3227_v35  ;;  %v3251_v35 = vpack.c.bf16 %v3995_v20, %v3994_v46  ;;  %v4001_v9 = vand.u32 4294901760, %v2647_v1  ;;  %v4007_v46 = vand.u32 4294901760, %v2657_v55  ;;  %v4008_v20 = vand.u32 4294901760, %v2659_v3  ;;  %2023 = vmatpush1.bf16.msra.mxu0 %v4010_v57  ;;  %2215 = vmatpush1.bf16.msra.mxu1 %v4011_v52  ;;  %v4023_v57 = vld [vmem:[#allocation102_spill] sm:$0xff]  ;;  %v4024_v52 = vld [vmem:[#allocation103_spill] sm:$0xff] }
  0x95   :  { %3980 = vst [vmem:[#allocation49_spill] sm:$0xff] %v3221_v18  ;;  %v3245_v18 = vpack.c.bf16 %v3992_v43, %v3991_v27  ;;  %3999 = vst [vmem:[#allocation61_spill] sm:$0xff] %v3257_v6  ;;  %v4003_v27 = vand.u32 4294901760, %v2651_v29  ;;  %v4004_v43 = vld [vmem:[#allocation81_spill] sm:$0xff]  ;;  %v4012_v6 = vand.u32 4294901760, %v2665_v33  ;;  %v4016_v29 = vand.u32 4294901760, %v2671_v11  ;;  %2025 = vmatprep.subr.bf16.mxu0 %v4023_v57  ;;  %2217 = vmatprep.subr.bf16.mxu1 %v4024_v52 }
  0x96   :  { %3996 = vst [vmem:[#allocation54_spill] sm:$0xff] %v3251_v35  ;;  %v3263_v62 = vpack.c.bf16 %v4001_v9, %v4000_v12  ;;  %v3275_v35 = vpack.c.bf16 %v4008_v20, %v4007_v46  ;;  %v4013_v12 = vld [vmem:[#allocation85_spill] sm:$0xff]  ;;  %v4025_v33 = vand.u32 4294901760, %v2696_v38  ;;  %v4036_v57 = vld [vmem:[#allocation95_spill] sm:$0xff]  ;;  %v4037_v52 = vld [vmem:[#allocation16_spill] sm:$0xff] }
  0x97   :  { %3993 = vst [vmem:[#allocation92_spill] sm:$0xff] %v3245_v18  ;;  %v4005_v18 = vand.u32 4294901760, %v4004_v43  ;;  %v4014_v9 = vand.u32 4294901760, %v4013_v12  ;;  %v4020_v46 = vld [vmem:[#allocation89_spill] sm:$0xff]  ;;  %v4038_v38 = vld [vmem:[#allocation15_spill] sm:$0xff] }
  0x98   :  { %4002 = vst [vmem:[#allocation64_spill] sm:$0xff] %v3263_v62  ;;  %4009 = vst [vmem:[#allocation56_spill] sm:$0xff] %v3275_v35  ;;  %v4021_v20 = vand.u32 4294901760, %v4020_v46 }
  0x99   :  { %v3269_v44 = vpack.c.bf16 %v4005_v18, %v4003_v27  ;;  %v3283_v62 = vpack.c.bf16 %v4014_v9, %v4012_v6  ;;  %v4017_v18 = vand.u32 4294901760, %v2677_v56  ;;  %v4026_v6 = vand.u32 4294901760, %v2698_v48 }
  0x9b   :  { %4006 = vst [vmem:[#allocation65_spill] sm:$0xff] %v3269_v44  ;;  %4015 = vst [vmem:[#allocation93_spill] sm:$0xff] %v3283_v62  ;;  %v3289_v27 = vpack.c.bf16 %v4017_v18, %v4016_v29  ;;  %v4019_v44 = vand.u32 4294901760, %v2681_v0  ;;  %v3303_v9 = vpack.c.bf16 %v4026_v6, %v4025_v33  ;;  %v4028_v62 = vld [vmem:[#allocation23_spill] sm:$0xff]  ;;  %v4029_v29 = vld [vmem:[#allocation24_spill] sm:$0xff]  ;;  %v4039_v33 = vpack.c.bf16 %v4037_v52, %v4038_v38 }
  0x9c   :  { %2027 = vmatpush1.bf16.msra.mxu0 %v4028_v62  ;;  %2219 = vmatpush1.bf16.msra.mxu1 %v4029_v29  ;;  %v4030_v18 = vld [vmem:[#allocation10_spill] sm:$0xff]  ;;  %v4040_v6 = vld [vmem:[#allocation19_spill] sm:$0xff]  ;;  %v4043_v29 = vld [vmem:[#allocation20_spill] sm:$0xff] }
  0x9d   :  { %4018 = vst [vmem:[#allocation69_spill] sm:$0xff] %v3289_v27  ;;  %v3295_v35 = vpack.c.bf16 %v4021_v20, %v4019_v44  ;;  %4027 = vst [vmem:[#allocation75_spill] sm:$0xff] %v3303_v9  ;;  %v4031_v27 = vld [vmem:[#allocation9_spill] sm:$0xff]  ;;  %v4034_v20 = vld [vmem:[#allocation11_spill] sm:$0xff] }
  0x9e   :  { %v4032_v0 = vpack.c.bf16 %v4030_v18, %v4031_v27  ;;  %v4033_v44 = vld [vmem:[#allocation13_spill] sm:$0xff]  ;;  %v4041_v62 = vld [vmem:[#allocation18_spill] sm:$0xff]  ;;  %v4044_v18 = vpack.c.bf16 %v2499_v47, %v4043_v29  ;;  %v4049_v47 = vpack.c.bf16 %v3901_v22, %v3900_v15  ;;  %v4078_v22 = vld [vmem:[#allocation8_spill] sm:$0xff] }
  0x9f   :  { %4022 = vst [vmem:[#allocation73_spill] sm:$0xff] %v3295_v35  ;;  %v4035_v35 = vpack.c.bf16 %v4033_v44, %v4034_v20  ;;  %450 = vmatmul.mubr.f32.vlgmr.msra.gmra.mrb[0].mxu0 %v4036_v57  ;;  %1305 = vmatmul.mubr.f32.vlgmr.msra.gmra.mrb[0].mxu1 %v4036_v57  ;;  %v4042_v9 = vpack.c.bf16 %v4040_v6, %v4041_v62  ;;  %v4081_v15 = vld [vmem:[#allocation14_spill] sm:$0xff]  ;;  %v4102_v29 = vld [vmem:[#allocation71_spill] sm:$0xff] }
  0xa0   :  { %2029 = vmatprep.subr.bf16.mxu0 %v4032_v0  ;;  %v4045_v0 = vpack.c.bf16 %v3894_v5, %v3893_v60  ;;  %v4047_v57 = vpack.c.bf16 %v3897_v21, %v3896_v59  ;;  %v4050_v5 = vpack.c.bf16 %v3903_v51, %v3902_v14  ;;  %v4051_v60 = vpack.c.bf16 %v2542_v36, %v3904_v53  ;;  %v4087_v51 = vld [vmem:[#allocation31_spill] sm:$0xff]  ;;  %v4088_v53 = vld [vmem:[#allocation34_spill] sm:$0xff] }
  0xa1   :  { %2221 = vmatprep.subr.bf16.mxu1 %v4035_v35  ;;  %2031 = vmatpush1.bf16.msra.mxu0 %v4039_v33  ;;  %v4046_v35 = vmov 0.0   ;;  %v4048_v33 = vpack.c.bf16 %v3899_v7, %v3898_v49  ;;  %v4052_v59 = vpack.c.bf16 %v2548_v50, %v2546_v45  ;;  %v4053_v7 = vpack.c.bf16 %v3906_v23, %v2552_v54  ;;  %v4068_v23 = vld [vmem:[#allocation80_spill] sm:$0xff]  ;;  %v4086_v49 = vld [vmem:[#allocation29_spill] sm:$0xff] }
  0xa2   :  { %2223 = vmatpush1.bf16.msra.mxu1 %v4042_v9  ;;  %2033 = vmatprep.subr.bf16.mxu0 %v4044_v18  ;;  %v4054_v21 = vpack.c.bf16 %v3908_v40, %v3907_v16  ;;  %v4055_v14 = vpack.c.bf16 %v3910_v26, %v3909_v41  ;;  %v4056_v36 = vpack.c.bf16 %v3912_v13, %v3911_v28  ;;  %v4064_v41 = vld [vmem:[#allocation72_spill] sm:$0xff]  ;;  %v4090_v16 = vld [vmem:[#allocation39_spill] sm:$0xff] }
  0xa3   :  { %2225 = vmatprep.subr.bf16.mxu1 %v4045_v0  ;;  %584 = vmatprep.mubr.f32.mxu0 %v4046_v35  ;;  %v4057_v45 = vpack.c.bf16 %v3914_v17, %v3913_v24  ;;  %v4058_v50 = vpack.c.bf16 %v3859_v32, %v3858_v19  ;;  %v4059_v40 = vpack.c.bf16 %v3978_v42, %v3976_v39  ;;  %v4093_v39 = vld [vmem:[#allocation46_spill] sm:$0xff]  ;;  %v4094_v42 = vld [vmem:[#allocation48_spill] sm:$0xff]  ;;  %v4099_v9 = vld [vmem:[#allocation63_spill] sm:$0xff] }
  0xa4   :  { %1439 = vmatprep.mubr.f32.mxu1 %v4046_v35  ;;  %v4060_v26 = vpack.c.bf16 %v3982_v31, %v3918_v2  ;;  %v4061_v28 = vpack.c.bf16 %v3921_v30, %v3920_v4  ;;  %v4062_v17 = vpack.c.bf16 %v2619_v61, %v3870_v58  ;;  %v4063_v24 = vpack.c.bf16 %v3874_v10, %v3924_v37  ;;  %v4071_v58 = vld [vmem:[#allocation84_spill] sm:$0xff]  ;;  %v4084_v4 = vld [vmem:[#allocation22_spill] sm:$0xff]  ;;  %v4089_v37 = vld [vmem:[#allocation37_spill] sm:$0xff] }
  0xa5   :  { %2035 = vmatpush1.bf16.msra.mxu0 %v4047_v57  ;;  %v4065_v54 = vpack.c.bf16 %v3925_v25, %v4064_v41  ;;  %v4066_v32 = vpack.c.bf16 %v3927_v63, %v3926_v8  ;;  %v4067_v19 = vpack.c.bf16 %v2647_v1, %v3928_v34  ;;  %v4069_v61 = vpack.c.bf16 %v4004_v43, %v4068_v23  ;;  %v4074_v8 = vld [vmem:[#allocation88_spill] sm:$0xff]  ;;  %v4076_v34 = vld [vmem:[#allocation91_spill] sm:$0xff]  ;;  %v4092_v25 = vld [vmem:[#allocation42_spill] sm:$0xff] }
  0xa6   :  { %2227 = vmatpush1.bf16.msra.mxu1 %v4048_v33  ;;  %2037 = vmatprep.subr.bf16.mxu0 %v4049_v47  ;;  %v4070_v10 = vpack.c.bf16 %v2659_v3, %v2657_v55  ;;  %v4072_v30 = vpack.c.bf16 %v4013_v12, %v4071_v58  ;;  %v4073_v63 = vpack.c.bf16 %v2677_v56, %v2671_v11  ;;  %v4079_v55 = vld [vmem:[#allocation12_spill] sm:$0xff]  ;;  %v4080_v3 = vld [vmem:[#allocation97_spill] sm:$0xff]  ;;  %v4095_v31 = vld [vmem:[#allocation51_spill] sm:$0xff] }
  0xa7   :  { %2229 = vmatprep.subr.bf16.mxu1 %v4050_v5  ;;  %v4075_v1 = vpack.c.bf16 %v4020_v46, %v4074_v8  ;;  %v4077_v13 = vpack.c.bf16 %v2698_v48, %v4076_v34  ;;  %v4082_v11 = vld [vmem:[#allocation17_spill] sm:$0xff]  ;;  %v4085_v48 = vld [vmem:[#allocation26_spill] sm:$0xff]  ;;  %v4091_v2 = vld [vmem:[#allocation40_spill] sm:$0xff] }
  0xa8   :  { %v4083_v56 = vld [vmem:[#allocation21_spill] sm:$0xff]  ;;  %v4096_v43 = vld [vmem:[#allocation55_spill] sm:$0xff]  ;;  %v4098_v46 = vld [vmem:[#allocation60_spill] sm:$0xff] }
  0xa9   :  { %2039 = vmatpush1.bf16.msra.mxu0 %v4051_v60  ;;  %v4097_v12 = vld [vmem:[#allocation57_spill] sm:$0xff]  ;;  %v4100_v18 = vld [vmem:[#allocation67_spill] sm:$0xff]  ;;  %v4101_v57 = vld [vmem:[#allocation68_spill] sm:$0xff] }
  0xaa   :  { %2231 = vmatpush1.bf16.msra.mxu1 %v4052_v59  ;;  %2041 = vmatprep.subr.bf16.mxu0 %v4053_v7  ;;  %v4103_v0 = vld [vmem:[#allocation74_spill] sm:$0xff]  ;;  %v4105_v47 = vld [vmem:[#allocation79_spill] sm:$0xff]  ;;  %v4109_v7 = vand.u32 4294901760, %v4031_v27  ;;  %v4119_v27 = vand.u32 4294901760, %v4040_v6  ;;  %v4125_v6 = vld [vmem:[#allocation32_spill] sm:$0xff] }
  0xab   :  { %2233 = vmatprep.subr.bf16.mxu1 %v4054_v21  ;;  %v4104_v33 = vld [vmem:[#allocation78_spill] sm:$0xff]  ;;  %v4107_v60 = vld [vmem:[#allocation83_spill] sm:$0xff]  ;;  %v4130_v58 = vld [vmem:[#allocation41_spill] sm:$0xff] }
  0xac   :  { %v4106_v5 = vld [vmem:[#allocation82_spill] sm:$0xff]  ;;  %v4127_v23 = vld [vmem:[#allocation35_spill] sm:$0xff]  ;;  %v4133_v8 = vld [vmem:[#allocation45_spill] sm:$0xff] }
  0xad   :  { %2043 = vmatpush1.bf16.msra.mxu0 %v4055_v14  ;;  %v4108_v59 = vld [vmem:[#allocation86_spill] sm:$0xff]  ;;  %v4135_v34 = vld [vmem:[#allocation49_spill] sm:$0xff] }
  0xae   :  { %2235 = vmatpush1.bf16.msra.mxu1 %v4056_v36  ;;  %2045 = vmatprep.subr.bf16.mxu0 %v4057_v45  ;;  %v4110_v21 = vld [vmem:[#allocation10_spill] sm:$0xff]  ;;  %v4112_v45 = vand.u32 4294901760, %v4034_v20 }
  0xaf   :  { %2237 = vmatprep.subr.bf16.mxu1 %v4058_v50  ;;  %v4111_v14 = vand.u32 4294901760, %v4110_v21  ;;  %v4113_v50 = vand.u32 4294901760, %v4033_v44  ;;  %v4120_v20 = vld [vmem:[#allocation98_spill] sm:$0xff]  ;;  %v4121_v44 = vld [vmem:[#allocation25_spill] sm:$0xff]  ;;  %v4139_v21 = vld [vmem:[#allocation92_spill] sm:$0xff] }
  0xb1   :  { %2047 = vmatpush1.bf16.msra.mxu0 %v4059_v40  ;;  %v2092_v36 = vpack.c.bf16 %v4111_v14, %v4109_v7  ;;  %v2284_v40 = vpack.c.bf16 %v4113_v50, %v4112_v45  ;;  %v4138_v7 = vld [vmem:[#allocation53_spill] sm:$0xff]  ;;  %v4140_v14 = vld [vmem:[#allocation54_spill] sm:$0xff]  ;;  %v4142_v45 = vld [vmem:[#allocation64_spill] sm:$0xff] }
  0xb2   :  { %2239 = vmatpush1.bf16.msra.mxu1 %v4060_v26  ;;  %2049 = vmatprep.subr.bf16.mxu0 %v4061_v28  ;;  %v4114_v26 = vld [vmem:[#allocation87_spill] sm:$0xff]  ;;  %v4115_v28 = vld [vmem:[#allocation90_spill] sm:$0xff]  ;;  %v4143_v50 = vld [vmem:[#allocation65_spill] sm:$0xff] }
  0xb3   :  { %2241 = vmatprep.subr.bf16.mxu1 %v4062_v17  ;;  %v4116_v17 = vand.u32 4294901760, %v4038_v38  ;;  %v4123_v38 = vld [vmem:[#allocation28_spill] sm:$0xff] }
  0xb5   :  { %2051 = vmatpush1.bf16.msra.mxu0 %v4063_v24  ;;  %v4117_v24 = vand.u32 4294901760, %v4037_v52  ;;  %v4124_v52 = vld [vmem:[#allocation30_spill] sm:$0xff] }
  0xb6   :  { %2243 = vmatpush1.bf16.msra.mxu1 %v4065_v54  ;;  %2053 = vmatprep.subr.bf16.mxu0 %v4066_v32  ;;  %v4118_v54 = vand.u32 4294901760, %v4041_v62  ;;  %v4126_v62 = vld [vmem:[#allocation33_spill] sm:$0xff] }
  0xb7   :  { %2245 = vmatprep.subr.bf16.mxu1 %v4067_v19  ;;  %v2094_v41 = vpack.c.bf16 %v4117_v24, %v4116_v17  ;;  %v4122_v19 = vld [vmem:[#allocation27_spill] sm:$0xff]  ;;  %v4145_v17 = vld [vmem:[#allocation93_spill] sm:$0xff] }
  0xb8   :  { %v2286_v32 = vpack.c.bf16 %v4119_v27, %v4118_v54  ;;  %v4146_v24 = vld [vmem:[#allocation69_spill] sm:$0xff]  ;;  %v4148_v54 = vld [vmem:[#allocation75_spill] sm:$0xff] }
  0xb9   :  { %2055 = vmatpush1.bf16.msra.mxu0 %v4069_v61  ;;  %v4128_v61 = vld [vmem:[#allocation36_spill] sm:$0xff]  ;;  %v4149_v27 = vld [vmem:[#allocation95_spill] sm:$0xff] }
  0xba   :  { %2247 = vmatpush1.bf16.msra.mxu1 %v4070_v10  ;;  %2057 = vmatprep.subr.bf16.mxu0 %v4072_v30  ;;  %v4129_v10 = vld [vmem:[#allocation38_spill] sm:$0xff]  ;;  %v4131_v30 = vld [vmem:[#allocation43_spill] sm:$0xff] }
  0xbb   :  { %2249 = vmatprep.subr.bf16.mxu1 %v4073_v63  ;;  %v4132_v63 = vld [vmem:[#allocation44_spill] sm:$0xff] }
  0xbd   :  { %2059 = vmatpush1.bf16.msra.mxu0 %v4075_v1  ;;  %v4134_v1 = vld [vmem:[#allocation47_spill] sm:$0xff] }
  0xbe   :  { %2251 = vmatpush1.bf16.msra.mxu1 %v4077_v13  ;;  %2061 = vmatprep.subr.bf16.mxu0 %v4078_v22  ;;  %v4136_v13 = vld [vmem:[#allocation50_spill] sm:$0xff] }
  0xbf   :  { %2253 = vmatprep.subr.bf16.mxu1 %v4079_v55 }
  0xc0   :  { %587 = vmatmul.mubr.f32.vlgmr.msra.gmra.mrb[0].mxu0 %v4080_v3 }
  0xc1   :  { %1442 = vmatmul.mubr.f32.vlgmr.msra.gmra.mrb[0].mxu1 %v4080_v3  ;;  %2063 = vmatpush1.bf16.msra.mxu0 %v4081_v15  ;;  %v4137_v3 = vld [vmem:[#allocation52_spill] sm:$0xff] }
  0xc2   :  { %2255 = vmatpush1.bf16.msra.mxu1 %v4082_v11  ;;  %2065 = vmatprep.subr.bf16.mxu0 %v4083_v56 }
  0xc3   :  { %2257 = vmatprep.subr.bf16.mxu1 %v4084_v4  ;;  %689 = vmatprep.mubr.f32.mxu0 %v4046_v35 }
  0xc4   :  { %1544 = vmatprep.mubr.f32.mxu1 %v4046_v35 }
  0xc5   :  { %2067 = vmatpush1.bf16.msra.mxu0 %v4085_v48 }
  0xc6   :  { %2259 = vmatpush1.bf16.msra.mxu1 %v4086_v49  ;;  %2069 = vmatprep.subr.bf16.mxu0 %v4087_v51 }
  0xc7   :  { %2261 = vmatprep.subr.bf16.mxu1 %v4088_v53 }
  0xc9   :  { %2071 = vmatpush1.bf16.msra.mxu0 %v4089_v37 }
  0xca   :  { %2263 = vmatpush1.bf16.msra.mxu1 %v4090_v16  ;;  %2073 = vmatprep.subr.bf16.mxu0 %v4091_v2 }
  0xcb   :  { %2265 = vmatprep.subr.bf16.mxu1 %v4092_v25 }
  0xcd   :  { %2075 = vmatpush1.bf16.msra.mxu0 %v4093_v39 }
  0xce   :  { %2267 = vmatpush1.bf16.msra.mxu1 %v4094_v42  ;;  %2077 = vmatprep.subr.bf16.mxu0 %v4095_v31 }
  0xcf   :  { %2269 = vmatprep.subr.bf16.mxu1 %v4096_v43 }
  0xd1   :  { %2079 = vmatpush1.bf16.msra.mxu0 %v4097_v12 }
  0xd2   :  { %2271 = vmatpush1.bf16.msra.mxu1 %v4098_v46  ;;  %2081 = vmatprep.subr.bf16.mxu0 %v4099_v9 }
  0xd3   :  { %2273 = vmatprep.subr.bf16.mxu1 %v4100_v18 }
  0xd5   :  { %2083 = vmatpush1.bf16.msra.mxu0 %v4101_v57 }
  0xd6   :  { %2275 = vmatpush1.bf16.msra.mxu1 %v4102_v29  ;;  %2085 = vmatprep.subr.bf16.mxu0 %v4103_v0 }
  0xd7   :  { %2277 = vmatprep.subr.bf16.mxu1 %v4104_v33 }
  0xd9   :  { %2087 = vmatpush1.bf16.msra.mxu0 %v4105_v47 }
  0xda   :  { %2279 = vmatpush1.bf16.msra.mxu1 %v4106_v5  ;;  %2089 = vmatprep.subr.bf16.mxu0 %v4107_v60 }
  0xdb   :  { %2281 = vmatprep.subr.bf16.mxu1 %v4108_v59 }
  0xdd   :  { %2091 = vmatpush1.bf16.msra.mxu0 %v4114_v26 }
  0xde   :  { %2283 = vmatpush1.bf16.msra.mxu1 %v4115_v28  ;;  %2093 = vmatprep.subr.bf16.mxu0 %v2092_v36  ;;  %v4141_v36 = vld [vmem:[#allocation61_spill] sm:$0xff] }
  0xdf   :  { %2285 = vmatprep.subr.bf16.mxu1 %v2284_v40  ;;  %v4144_v40 = vld [vmem:[#allocation56_spill] sm:$0xff] }
  0xe0   :  { %693 = vmatmul.mubr.f32.vlgmr.msra.gmra.mrb[0].mxu0 %v4120_v20 }
  0xe1   :  { %1548 = vmatmul.mubr.f32.vlgmr.msra.gmra.mrb[0].mxu1 %v4120_v20  ;;  %2095 = vmatpush1.bf16.msra.mxu0 %v2094_v41  ;;  %v4147_v41 = vld [vmem:[#allocation73_spill] sm:$0xff] }
  0xe2   :  { %2287 = vmatpush1.bf16.msra.mxu1 %v2286_v32  ;;  %2097 = vmatprep.subr.bf16.mxu0 %v4121_v44 }
  0xe3   :  { %2289 = vmatprep.subr.bf16.mxu1 %v4122_v19  ;;  %859 = vmatprep.mubr.f32.mxu0 %v4046_v35 }
  0xe4   :  { %1714 = vmatprep.mubr.f32.mxu1 %v4046_v35 }
  0xe5   :  { %2099 = vmatpush1.bf16.msra.mxu0 %v4123_v38 }
  0xe6   :  { %2291 = vmatpush1.bf16.msra.mxu1 %v4124_v52  ;;  %2101 = vmatprep.subr.bf16.mxu0 %v4125_v6 }
  0xe7   :  { %2293 = vmatprep.subr.bf16.mxu1 %v4126_v62 }
  0xe9   :  { %2103 = vmatpush1.bf16.msra.mxu0 %v4127_v23 }
  0xea   :  { %2295 = vmatpush1.bf16.msra.mxu1 %v4128_v61  ;;  %2105 = vmatprep.subr.bf16.mxu0 %v4129_v10 }
  0xeb   :  { %2297 = vmatprep.subr.bf16.mxu1 %v4130_v58 }
  0xed   :  { %2107 = vmatpush1.bf16.msra.mxu0 %v4131_v30 }
  0xee   :  { %2299 = vmatpush1.bf16.msra.mxu1 %v4132_v63  ;;  %2109 = vmatprep.subr.bf16.mxu0 %v4133_v8 }
  0xef   :  { %2301 = vmatprep.subr.bf16.mxu1 %v4134_v1 }
  0xf1   :  { %2111 = vmatpush1.bf16.msra.mxu0 %v4135_v34 }
  0xf2   :  { %2303 = vmatpush1.bf16.msra.mxu1 %v4136_v13  ;;  %2113 = vmatprep.subr.bf16.mxu0 %v4137_v3 }
  0xf3   :  { %2305 = vmatprep.subr.bf16.mxu1 %v4138_v7 }
  0xf5   :  { %2115 = vmatpush1.bf16.msra.mxu0 %v4139_v21 }
  0xf6   :  { %2307 = vmatpush1.bf16.msra.mxu1 %v4140_v14  ;;  %2117 = vmatprep.subr.bf16.mxu0 %v4141_v36 }
  0xf7   :  { %2309 = vmatprep.subr.bf16.mxu1 %v4142_v45 }
  0xf9   :  { %2119 = vmatpush1.bf16.msra.mxu0 %v4143_v50 }
  0xfa   :  { %2311 = vmatpush1.bf16.msra.mxu1 %v4144_v40  ;;  %2121 = vmatprep.subr.bf16.mxu0 %v4145_v17 }
  0xfb   :  { %2313 = vmatprep.subr.bf16.mxu1 %v4146_v24 }
  0xfd   :  { %2123 = vmatpush1.bf16.msra.mxu0 %v4147_v41 }
  0xfe   :  { %2315 = vmatpush1.bf16.msra.mxu1 %v4148_v54  ;;  %2125 = vmatprep.subr.bf16.mxu0 %v4078_v22 }
  0xff   :  { %2317 = vmatprep.subr.bf16.mxu1 %v4079_v55 }
 0x100   :  { %861 = vmatmul.mubr.f32.vlgmr.msra.gmra.mrb[0].mxu0 %v4149_v27 }
 0x101   :  { %1716 = vmatmul.mubr.f32.vlgmr.msra.gmra.mrb[0].mxu1 %v4149_v27  ;;  %2127 = vmatpush1.bf16.msra.mxu0 %v4081_v15 }
 0x102   :  { %2319 = vmatpush1.bf16.msra.mxu1 %v4082_v11  ;;  %2129 = vmatprep.subr.bf16.mxu0 %v4083_v56 }
 0x103   :  { %2321 = vmatprep.subr.bf16.mxu1 %v4084_v4  ;;  %963 = vmatprep.mubr.f32.mxu0 %v4046_v35 }
 0x104   :  { %1818 = vmatprep.mubr.f32.mxu1 %v4046_v35 }
 0x105   :  { %2131 = vmatpush1.bf16.msra.mxu0 %v4085_v48 }
 0x106   :  { %2323 = vmatpush1.bf16.msra.mxu1 %v4086_v49  ;;  %2133 = vmatprep.subr.bf16.mxu0 %v4087_v51 }
 0x107   :  { %2325 = vmatprep.subr.bf16.mxu1 %v4088_v53 }
 0x109   :  { %2135 = vmatpush1.bf16.msra.mxu0 %v4089_v37 }
 0x10a   :  { %2327 = vmatpush1.bf16.msra.mxu1 %v4090_v16  ;;  %2137 = vmatprep.subr.bf16.mxu0 %v4091_v2 }
 0x10b   :  { %2329 = vmatprep.subr.bf16.mxu1 %v4092_v25 }
 0x10d   :  { %2139 = vmatpush1.bf16.msra.mxu0 %v4093_v39 }
 0x10e   :  { %2331 = vmatpush1.bf16.msra.mxu1 %v4094_v42  ;;  %2141 = vmatprep.subr.bf16.mxu0 %v4095_v31 }
 0x10f   :  { %2333 = vmatprep.subr.bf16.mxu1 %v4096_v43 }
 0x111   :  { %2143 = vmatpush1.bf16.msra.mxu0 %v4097_v12 }
 0x112   :  { %2335 = vmatpush1.bf16.msra.mxu1 %v4098_v46  ;;  %2145 = vmatprep.subr.bf16.mxu0 %v4099_v9 }
 0x113   :  { %2337 = vmatprep.subr.bf16.mxu1 %v4100_v18 }
 0x115   :  { %2147 = vmatpush1.bf16.msra.mxu0 %v4101_v57 }
 0x116   :  { %2339 = vmatpush1.bf16.msra.mxu1 %v4102_v29  ;;  %2149 = vmatprep.subr.bf16.mxu0 %v4103_v0  ;;  %v1886_v0 = vlaneseq }
 0x117   :  { %2341 = vmatprep.subr.bf16.mxu1 %v4104_v33 }
 0x119   :  { %2151 = vmatpush1.bf16.msra.mxu0 %v4105_v47 }
 0x11a   :  { %2343 = vmatpush1.bf16.msra.mxu1 %v4106_v5  ;;  %2153 = vmatprep.subr.bf16.mxu0 %v4107_v60 }
 0x11b   :  { %2345 = vmatprep.subr.bf16.mxu1 %v4108_v59 }
 0x11d   :  { %2155 = vmatpush1.bf16.msra.mxu0 %v4114_v26  ;;  %v1887_v26 = vshrl.u32 %v1886_v0, 7 }
 0x11e   :  { %2347 = vmatpush1.bf16.msra.mxu1 %v4115_v28 }
 0x11f   :  { %v1888_v19 = vsub.s32 0, %v1887_v26 }
 0x120   :  { %965 = vmatmul.mubr.f32.vlgmr.msra.gmra.mrb[0].mxu0 %v4149_v27 }
 0x121   :  { %1820 = vmatmul.mubr.f32.vlgmr.msra.gmra.mrb[0].mxu1 %v4149_v27 }
 0x1f3   :  { %v3529_v35 = vpop.f32.mrb[0].mxu0 }
 0x1f4   :  { %v1821_v22 = vpop.f32.mrb[0].mxu1  ;;  %v968_v15 = vpop.f32.mrb[1].mxu0  ;;  %v1826_v54 = vmul.f32 %v3529_v35, %v3529_v35 }
 0x1f5   :  { %v1842_v55 = vmul.f32 %v1821_v22, %v1821_v22  ;;  %v1823_v11 = vpop.f32.mrb[1].mxu1  ;;  %v1834_v56 = vmul.f32 %v968_v15, %v968_v15  ;;  %v1858_v4 = vmul.f32 %v1821_v22, %v968_v15 }
 0x1f6   :  { %v1850_v48 = vmul.f32 %v1823_v11, %v1823_v11  ;;  %v1866_v49 = vmul.f32 %v1823_v11, %v968_v15 }
 0x1f7   :  { %v1844_v51 = vrot.slane %v1842_v55, 1  ;;  %v1836_v53 = vrot.slane %v1834_v56, 1  ;;  %v1847_v16 = vrot.slane %v1842_v55, 2  ;;  %v1839_v39 = vrot.slane %v1834_v56, 2 }
 0x1f8   :  { %v1852_v2 = vrot.slane %v1850_v48, 1  ;;  %v1855_v43 = vrot.slane %v1850_v48, 2  ;;  %v1860_v33 = vrot.slane %v1858_v4, 1  ;;  %v1868_v47 = vrot.slane %v1866_v49, 1 }
 0x1f9   :  { %v1846_v37 = vadd.f32 %v1844_v51, %v1842_v55  ;;  %v1838_v25 = vadd.f32 %v1836_v53, %v1834_v56  ;;  %v1863_v32 = vrot.slane %v1858_v4, 2  ;;  %v1871_v20 = vrot.slane %v1866_v49, 2 }
 0x1fa   :  { %v1854_v31 = vadd.f32 %v1852_v2, %v1850_v48  ;;  %v1862_v59 = vadd.f32 %v1860_v33, %v1858_v4  ;;  %v1870_v28 = vadd.f32 %v1868_v47, %v1866_v49  ;;  %v1919_v4 = vand.u32 127, %v1886_v0 }
 0x1fb   :  { %v1849_v42 = vadd.f32 %v1847_v16, %v1846_v37  ;;  %v1841_v12 = vadd.f32 %v1839_v39, %v1838_v25  ;;  %v1831_v51 = vrot.slane %v1826_v54, 2 }
 0x1fc   :  { %v1857_v9 = vadd.f32 %v1855_v43, %v1854_v31  ;;  %v1865_v44 = vadd.f32 %v1863_v32, %v1862_v59  ;;  %v1873_v38 = vadd.f32 %v1871_v20, %v1870_v28  ;;  %vm1920_vm0 = vcmp.lt.s32.totalorder %v1919_v4, 25 }
 0x1fd   :  { %v1875_v46 = vadd.f32 1e-06, %v1849_v42  ;;  %v1874_v18 = vadd.f32 1e-06, %v1841_v12 }
 0x1fe   :  { %v1879_v57 = vadd.f32 1e-06, %v1857_v9 }
 0x1ff   :  { %v1876_v29 = vmul.f32 %v1875_v46, %v1874_v18  ;;  %2383 = vrcp.f32 %v1874_v18 }
 0x200   :  { %v1880_v5 = vmul.f32 %v1879_v57, %v1874_v18  ;;  %v1899_v60 = vmul.f32 %v1879_v57, %v1875_v46 }
 0x201   :  { %2385 = vrsqrt.f32 %v1876_v29 }
 0x202   :  { %2387 = vrsqrt.f32 %v1880_v5 }
 0x209   :  { %v2384_v52 = vpop.eup %2383 }
 0x20a   :  { %v1885_v6 = vmul.f32 %v2384_v52, %v1865_v44  ;;  %v1892_v62 = vmul.f32 %v2384_v52, %v1873_v38 }
 0x20b   :  { %v2386_v23 = vpop.eup %2385 }
 0x20c   :  { %v2388_v61 = vpop.eup %2387  ;;  %v1878_v10 = vmul.f32 %v2386_v23, %v1865_v44  ;;  %v1889_v58 = vrot.slane %v1885_v6, %v1888_v19  ;;  %v1896_v30 = vrot.slane %v1892_v62, %v1888_v19 }
 0x20d   :  { %v1882_v63 = vmul.f32 %v2388_v61, %v1873_v38 }
 0x20e   :  { %v1890_v8 = vmul.f32 %v1889_v58, %v968_v15  ;;  %v1900_v1 = vmul.f32 %v1878_v10, %v1878_v10  ;;  %v1897_v34 = vmul.f32 %v1896_v30, %v968_v15  ;;  %v1828_v15 = vrot.slane %v1826_v54, 1 }
 0x20f   :  { %v1904_v13 = vmul.f32 %v1882_v63, %v1882_v63 }
 0x210   :  { %v1901_v3 = vsub.f32 1.0, %v1900_v1  ;;  %v1891_v7 = vsub.f32 %v1821_v22, %v1890_v8  ;;  %v1898_v21 = vsub.f32 %v1823_v11, %v1897_v34  ;;  %v1830_v11 = vadd.f32 %v1828_v15, %v1826_v54 }
 0x211   :  { %v1905_v14 = vsub.f32 1.0, %v1904_v13 }
 0x212   :  { %v1902_v36 = vadd.f32 1e-06, %v1901_v3  ;;  %v1908_v45 = vmul.f32 %v1898_v21, %v1891_v7  ;;  %v1833_v37 = vadd.f32 %v1831_v51, %v1830_v11 }
 0x213   :  { %v1906_v40 = vadd.f32 1e-06, %v1905_v14 }
 0x214   :  { %v1903_v50 = vmul.f32 %v1902_v36, %v1899_v60  ;;  %v1910_v24 = vrot.slane %v1908_v45, 1  ;;  %v1913_v27 = vrot.slane %v1908_v45, 2 }
 0x216   :  { %v1907_v17 = vmul.f32 %v1906_v40, %v1903_v50  ;;  %v1912_v41 = vadd.f32 %v1910_v24, %v1908_v45 }
 0x218   :  { %2389 = vrsqrt.f32 %v1907_v17  ;;  %v1915_v55 = vadd.f32 %v1913_v27, %v1912_v41 }
 0x222   :  { %v2390_v56 = vpop.eup %2389 }
 0x223   :  { %v1917_v48 = vmul.f32 %v2390_v56, %v1915_v55 }
 0x225   :  { %v1921_v22 = vadd.f32 1.0, %v1917_v48 }
 0x227   :  { %v1922_v49 = vmul.f32 %v1921_v22, %v1921_v22 }
 0x229   :  { %v1923_v53 = vsel %vm1920_vm0, %v1922_v49, 0.0 }
 0x22a   :  { %v1925_v16 = vrot.slane %v1923_v53, 7 }
 0x22c   :  { %v1928_v2 = vsel %vm1927_vm1, %v1833_v37, %v1925_v16 }
 0x22d   :  { %v1930_v25 = vsel %vm1929_vm2, %v1928_v2, 0.0 }
 0x22e   :  { %1931 = vadd.xlane.f32.xlu0 %v1930_v25 }
 0x2bb   :  { %v1932_v35 = vpop.xlane.xlu0 %1931 }
 0x2bc   :  { %v1938_v39 = vrot.slane %v1932_v35, 1  ;;  %2368 = vpush %v1932_v35 }
 0x2be   :  { %2370 = vpush %v1938_v39 }
 0x2ed   :  { %s2369_s9 = spop %2368 }
 0x2ee   :  { %1936 = sst [smem:[#allocation5]] %s2369_s9 }
 0x2ef   :  { %s2371_s10 = spop %2370 }
 0x2f0   :  { %1942 = sst [smem:[#allocation5 + $0x1]] %s2371_s10 }
 0x2f1   :  { %2424 = shalt.err (!%p2421_p12)
}
 0x2f2   :  { %s2433_s12 = smov [#allocation5]  }
 0x2f3   :  { %1954 = dma.smem_to_vmem %s2433_s12, 16, %s1952_s8, [#allocation4]  }
 0x2f4   :  { %2427 = dma.done.wait [#allocation4], 16  }
 0x2f5   :  { %2428 = vsyncadd [#allocation4], 4294967280 }
 0x2f6   :  { %1960 = sfence }
 0x2f7   :  { %1961 = vsyncpa [#allocation3], 1 }
 0x2f8   :  { %1962 = vsyncpa [#allocation4], 1 }

</bundles_post_ra>
